<compile_context>
chip_gen: v5e
topology: v5e:2x2
jax: 0.10.0
libtpu: 0.0.40
codegen_flags: <defaults>
</compile_context>

<pallas_src>
import functools

import jax
import jax.numpy as jnp
from jax import lax
from jax.experimental import pallas as pl
from jax.experimental.pallas import tpu as pltpu


def _loss_kernel(x_ref, wd_ref, bd_ref, conf_ref, ann_ref, out_ref, acc_ref, *, lam):
    pid = pl.program_id(0)

    @pl.when(pid == 0)
    def _init():
        acc_ref[0] = 0.0

    # Classifier collapsed to the 2-class log-odds:
    #   z1 = softmax(logits)[:, 1] = sigmoid(x @ (w1 - w0) + (b1 - b0)).
    # RHS-transposed dot (contract the D axis of both) gives the result
    # lane-dense in N: (1, D) . (tm, D)^T -> (1, tm).
    t = lax.dot_general(
        wd_ref[...], x_ref[...],
        dimension_numbers=(((1,), (1,)), ((), ())),
        preferred_element_type=jnp.float32,
        precision=lax.Precision.HIGHEST)                    # (1, tm)
    t = t + bd_ref[...]                                     # (1,1) broadcast
    z1 = pl.reciprocal(1.0 + jnp.exp(-t), approx=False)     # sigmoid, (1, tm)

    # Confusion softmax; conf_ref is (C_k, W, C_l) so the softmax axis (l,
    # original dim 2) is the minor axis.  Tiny tensor -> negligible per step.
    conf = conf_ref[...]
    cm = jnp.max(conf, axis=2, keepdims=True)
    ec = jnp.exp(conf - cm)
    pm = ec * pl.reciprocal(jnp.sum(ec, axis=2, keepdims=True), approx=False)
    p00 = pm[0, :, 0:1]          # (W, 1) == pm[w, 0, 0]
    p10 = pm[1, :, 0:1]          # (W, 1) == pm[w, 1, 0]

    # ann_pred[:, :, 0] laid out as (W, tm); class-1 column is 1 - a0 since
    # every pm row sums to 1 and z0 + z1 == 1.
    a0 = p00 + z1 * (p10 - p00)                              # (W, tm)
    a1 = 1.0 - a0

    # CrossEntropy(ignore_index=-1, reduction='sum') on the 2-class scores.
    # a0, a1 in (0, 1) -> no max-shift needed in the LSE.
    ann = ann_ref[...]                                       # (W, tm) int32
    lse = jnp.log(jnp.exp(a0) + jnp.exp(a1))
    picked = jnp.where(ann == 1, a1, a0)
    ce = jnp.where(ann != -1, lse - picked, 0.0)             # where, not mask-mul
    acc_ref[0] = acc_ref[0] + jnp.sum(ce)

    @pl.when(pid == pl.num_programs(0) - 1)
    def _finalize():
        reg = jnp.sum(jnp.log(p00))                          # sum_w log(pm[w,0,0])
        out_ref[0] = acc_ref[0] + lam * reg


def model_loss(x, ann, cls_w, cls_b, confusion, lam, *, tm=512):
    N, D = x.shape
    W, C, C2 = confusion.shape
    assert C == 2 and C2 == 2, "Model hard-codes n_classes == 2"
    assert tm % 128 == 0, "tm must be a lane multiple"

    nt = pl.cdiv(N, tm)
    n_pad = nt * tm

    x_f = x.astype(jnp.float32)
    if n_pad != N:
        x_f = jnp.pad(x_f, ((0, n_pad - N), (0, 0)))
    # Wrapper-side layout plumbing: worker axis to sublanes, N to lanes,
    # padded columns marked ignore_index so they contribute exactly 0.
    ann_t = jnp.pad(ann.astype(jnp.int32).T, ((0, 0), (0, n_pad - N)),
                    constant_values=-1)                      # (W, n_pad)

    wd = (cls_w[:, 1] - cls_w[:, 0]).astype(jnp.float32).reshape(1, D)
    bd = (cls_b[1] - cls_b[0]).astype(jnp.float32).reshape(1, 1)
    conf_r = jnp.transpose(confusion.astype(jnp.float32), (1, 0, 2))  # (C_k, W, C_l)

    kernel = functools.partial(_loss_kernel, lam=float(lam))
    out = pl.pallas_call(
        kernel,
        out_shape=jax.ShapeDtypeStruct((1,), jnp.float32),
        grid=(nt,),
        in_specs=[
            pl.BlockSpec((tm, D), lambda i: (i, 0)),        # x tile (streamed)
            pl.BlockSpec((1, D), lambda i: (0, 0)),         # wd   (VMEM-resident)
            pl.BlockSpec((1, 1), lambda i: (0, 0)),         # bd   (VMEM-resident)
            pl.BlockSpec((C, W, C), lambda i: (0, 0, 0)),   # confusion (resident)
            pl.BlockSpec((W, tm), lambda i: (0, i)),        # ann tile, lane-dense N
        ],
        out_specs=pl.BlockSpec(memory_space=pltpu.MemorySpace.SMEM),
        scratch_shapes=[pltpu.SMEM((1,), jnp.float32)],
        compiler_params=pltpu.CompilerParams(
            dimension_semantics=("arbitrary",)),            # serial CE accumulation
    )(x_f, wd, bd, conf_r, ann_t)
    return out  # shape (1,), matching the torch forward's output


if __name__ == "__main__":
    # args: n_tasks=4, n_workers_per_task=2, n_tasks_per_worker=2 -> n_worker=4
    N, D, C = 1200, 32, 2
    n_worker = 4 * 2 // 2
    init, lam = 1.0, 0.1

    key = jax.random.PRNGKey(0)
    kx, kw, kb, kc, ka = jax.random.split(key, 5)
    x = jax.random.normal(kx, (N, D), dtype=jnp.float32)
    cls_w = jax.random.normal(kw, (D, C), dtype=jnp.float32) * 0.1
    cls_b = jax.random.normal(kb, (C,), dtype=jnp.float32) * 0.1
    confusion = (jnp.stack([jnp.eye(C, dtype=jnp.float32) * init] * n_worker)
                 + 0.3 * jax.random.normal(kc, (n_worker, C, C), dtype=jnp.float32))
    ann = jax.random.randint(ka, (N, n_worker), -1, C, dtype=jnp.int32)

    loss = model_loss(x, ann, cls_w, cls_b, confusion, lam)   # grid = (3,), ragged last tile
    jax.block_until_ready(loss)

    # Plain-JAX reference for numerical verification.
    logits = jnp.dot(x, cls_w, precision=lax.Precision.HIGHEST) + cls_b
    z = jax.nn.softmax(logits, axis=1)
    pm = jax.nn.softmax(confusion, axis=2)
    ann_pred = jnp.einsum("ik,jkl->ijl", z, pm,
                          precision=lax.Precision.HIGHEST).reshape(-1, C)
    ann_flat = ann.reshape(-1)
    logp = jax.nn.log_softmax(ann_pred, axis=1)
    picked = jnp.take_along_axis(
        logp, jnp.clip(ann_flat, 0, C - 1)[:, None], axis=1)[:, 0]
    ce_ref = -jnp.sum(jnp.where(ann_flat != -1, picked, 0.0))
    reg_ref = jnp.sum(jnp.log(pm[:, 0, 0]))
    ref = ce_ref + lam * reg_ref

    assert jnp.allclose(loss[0], ref, atol=1e-3, rtol=5e-4), (loss, ref)
    print("KERNEL_OK")
</pallas_src>

<mosaic_0001>
module attributes {stable_mosaic.version = 11 : i64} {
  func.func @_loss_kernel(%arg0: i32, %arg1: memref<512x32xf32, #tpu.memory_space<vmem>>, %arg2: memref<1x32xf32, #tpu.memory_space<vmem>>, %arg3: memref<1x1xf32, #tpu.memory_space<vmem>>, %arg4: memref<2x4x2xf32, #tpu.memory_space<vmem>>, %arg5: memref<4x512xi32, #tpu.memory_space<vmem>>, %arg6: memref<1xf32, #tpu.memory_space<smem>>, %arg7: memref<1xf32, #tpu.memory_space<smem>>) attributes {dimension_semantics = [#tpu.dimension_semantics<arbitrary>], iteration_bounds = array<i64: 3>, scalar_prefetch = 0 : i64, scratch_operands = 1 : i64, tpu.core_type = #tpu.core_type<tc>, window_params = [{transform_indices = @transform_0, window_bounds = array<i64: 512, 32>}, {pipeline_mode = #tpu.pipeline_mode<synchronous>, transform_indices = @transform_1, window_bounds = array<i64: 1, 32>}, {pipeline_mode = #tpu.pipeline_mode<synchronous>, transform_indices = @transform_2, window_bounds = array<i64: 1, 1>}, {pipeline_mode = #tpu.pipeline_mode<synchronous>, transform_indices = @transform_3, window_bounds = array<i64: 2, 4, 2>}, {transform_indices = @transform_4, window_bounds = array<i64: 4, 512>}, {transform_indices = @transform_5, window_bounds = array<i64: 1>}]} {
    %c0_i32 = arith.constant 0 : i32
    %0 = arith.cmpi eq, %arg0, %c0_i32 : i32
    %1 = arith.extui %0 : i1 to i32
    %c0_i32_0 = arith.constant 0 : i32
    %2 = arith.cmpi ne, %1, %c0_i32_0 : i32
    scf.if %2 {
      %cst_21 = arith.constant 0.000000e+00 : f32
      %c0_22 = arith.constant 0 : index
      %61 = memref.load %arg7[%c0_22] : memref<1xf32, #tpu.memory_space<smem>>
      memref.store %cst_21, %arg7[%c0_22] : memref<1xf32, #tpu.memory_space<smem>>
    } else {
    }
    %c0 = arith.constant 0 : index
    %c0_1 = arith.constant 0 : index
    %3 = vector.load %arg2[%c0, %c0_1] : memref<1x32xf32, #tpu.memory_space<vmem>>, vector<1x32xf32>
    %c0_2 = arith.constant 0 : index
    %c0_3 = arith.constant 0 : index
    %4 = vector.load %arg1[%c0_2, %c0_3] : memref<512x32xf32, #tpu.memory_space<vmem>>, vector<512x32xf32>
    %cst = arith.constant dense<0.000000e+00> : vector<1x512xf32>
    %5 = tpu.matmul %3, %4, %cst {dimension_numbers = #tpu.dot_dimension_numbers<[1], [1], [0], [0], [0, 0, 1, 0], [], []>, precision = #tpu.contract_precision<fp32>} : vector<1x32xf32>, vector<512x32xf32>, vector<1x512xf32> -> vector<1x512xf32>
    %c0_4 = arith.constant 0 : index
    %c0_5 = arith.constant 0 : index
    %6 = vector.load %arg3[%c0_4, %c0_5] : memref<1x1xf32, #tpu.memory_space<vmem>>, vector<1x1xf32>
    %7 = vector.broadcast %6 : vector<1x1xf32> to vector<1x512xf32>
    %8 = arith.addf %5, %7 : vector<1x512xf32>
    %cst_6 = arith.constant 0.000000e+00 : f32
    %9 = vector.broadcast %cst_6 : f32 to vector<1x512xf32>
    %10 = arith.subf %9, %8 : vector<1x512xf32>
    %11 = math.exp %10 : vector<1x512xf32>
    %cst_7 = arith.constant 1.000000e+00 : f32
    %12 = vector.broadcast %cst_7 : f32 to vector<1x512xf32>
    %13 = arith.addf %12, %11 : vector<1x512xf32>
    %14 = tpu.reciprocal %13 : vector<1x512xf32> -> vector<1x512xf32>
    %c0_8 = arith.constant 0 : index
    %c0_9 = arith.constant 0 : index
    %c0_10 = arith.constant 0 : index
    %15 = vector.load %arg4[%c0_8, %c0_9, %c0_10] : memref<2x4x2xf32, #tpu.memory_space<vmem>>, vector<2x4x2xf32>
    %cst_11 = arith.constant dense<0xFF800000> : vector<2x4xf32>
    %16 = vector.multi_reduction <maximumf>, %15, %cst_11 [2] : vector<2x4x2xf32> to vector<2x4xf32>
    %17 = vector.shape_cast %16 : vector<2x4xf32> to vector<2x4x1xf32>
    %18 = vector.broadcast %17 : vector<2x4x1xf32> to vector<2x4x2xf32>
    %19 = arith.subf %15, %18 : vector<2x4x2xf32>
    %20 = math.exp %19 : vector<2x4x2xf32>
    %cst_12 = arith.constant dense<0.000000e+00> : vector<2x4xf32>
    %21 = vector.multi_reduction <add>, %20, %cst_12 [2] : vector<2x4x2xf32> to vector<2x4xf32>
    %22 = vector.shape_cast %21 : vector<2x4xf32> to vector<2x4x1xf32>
    %23 = tpu.reciprocal %22 : vector<2x4x1xf32> -> vector<2x4x1xf32>
    %24 = vector.broadcast %23 : vector<2x4x1xf32> to vector<2x4x2xf32>
    %25 = arith.mulf %20, %24 : vector<2x4x2xf32>
    %26 = vector.extract_strided_slice %25 {offsets = [0, 0, 0], sizes = [1, 4, 1], strides = [1, 1, 1]} : vector<2x4x2xf32> to vector<1x4x1xf32>
    %27 = vector.shape_cast %26 : vector<1x4x1xf32> to vector<4x1xf32>
    %28 = vector.extract_strided_slice %25 {offsets = [1, 0, 0], sizes = [1, 4, 1], strides = [1, 1, 1]} : vector<2x4x2xf32> to vector<1x4x1xf32>
    %29 = vector.shape_cast %28 : vector<1x4x1xf32> to vector<4x1xf32>
    %30 = arith.subf %29, %27 : vector<4x1xf32>
    %31 = vector.broadcast %14 : vector<1x512xf32> to vector<4x512xf32>
    %32 = vector.broadcast %30 : vector<4x1xf32> to vector<4x512xf32>
    %33 = arith.mulf %31, %32 : vector<4x512xf32>
    %34 = vector.broadcast %27 : vector<4x1xf32> to vector<4x512xf32>
    %35 = arith.addf %34, %33 : vector<4x512xf32>
    %cst_13 = arith.constant 1.000000e+00 : f32
    %36 = vector.broadcast %cst_13 : f32 to vector<4x512xf32>
    %37 = arith.subf %36, %35 : vector<4x512xf32>
    %c0_14 = arith.constant 0 : index
    %c0_15 = arith.constant 0 : index
    %38 = vector.load %arg5[%c0_14, %c0_15] : memref<4x512xi32, #tpu.memory_space<vmem>>, vector<4x512xi32>
    %39 = math.exp %35 : vector<4x512xf32>
    %40 = math.exp %37 : vector<4x512xf32>
    %41 = arith.addf %39, %40 : vector<4x512xf32>
    %42 = math.log %41 : vector<4x512xf32>
    %c1_i32 = arith.constant 1 : i32
    %43 = vector.broadcast %c1_i32 : i32 to vector<4x512xi32>
    %44 = arith.cmpi eq, %38, %43 : vector<4x512xi32>
    %45 = arith.select %44, %37, %35 : vector<4x512xi1>, vector<4x512xf32>
    %c-1_i32 = arith.constant -1 : i32
    %46 = vector.broadcast %c-1_i32 : i32 to vector<4x512xi32>
    %47 = arith.cmpi ne, %38, %46 : vector<4x512xi32>
    %48 = arith.subf %42, %45 : vector<4x512xf32>
    %cst_16 = arith.constant 0.000000e+00 : f32
    %49 = vector.broadcast %cst_16 : f32 to vector<4x512xf32>
    %50 = arith.select %47, %48, %49 : vector<4x512xi1>, vector<4x512xf32>
    %c0_17 = arith.constant 0 : index
    %51 = memref.load %arg7[%c0_17] : memref<1xf32, #tpu.memory_space<smem>>
    %52 = vector.shape_cast %50 : vector<4x512xf32> to vector<1x4x512xf32>
    %cst_18 = arith.constant dense<0.000000e+00> : vector<1xf32>
    %53 = vector.multi_reduction <add>, %52, %cst_18 [1, 2] : vector<1x4x512xf32> to vector<1xf32>
    %54 = vector.shape_cast %53 : vector<1xf32> to vector<1x1x1xf32>
    %55 = vector.extract %54[0, 0, 0] : f32 from vector<1x1x1xf32>
    %56 = arith.addf %51, %55 : f32
    %c0_19 = arith.constant 0 : index
    %57 = memref.load %arg7[%c0_19] : memref<1xf32, #tpu.memory_space<smem>>
    memref.store %56, %arg7[%c0_19] : memref<1xf32, #tpu.memory_space<smem>>
    %c2_i32 = arith.constant 2 : i32
    %58 = arith.cmpi eq, %arg0, %c2_i32 : i32
    %59 = arith.extui %58 : i1 to i32
    %c0_i32_20 = arith.constant 0 : i32
    %60 = arith.cmpi ne, %59, %c0_i32_20 : i32
    scf.if %60 {
      %61 = math.log %27 : vector<4x1xf32>
      %62 = vector.shape_cast %61 : vector<4x1xf32> to vector<1x4x1xf32>
      %cst_21 = arith.constant dense<0.000000e+00> : vector<1xf32>
      %63 = vector.multi_reduction <add>, %62, %cst_21 [1, 2] : vector<1x4x1xf32> to vector<1xf32>
      %64 = vector.shape_cast %63 : vector<1xf32> to vector<1x1x1xf32>
      %65 = vector.extract %64[0, 0, 0] : f32 from vector<1x1x1xf32>
      %c0_22 = arith.constant 0 : index
      %66 = memref.load %arg7[%c0_22] : memref<1xf32, #tpu.memory_space<smem>>
      %cst_23 = arith.constant 1.000000e-01 : f32
      %67 = arith.mulf %cst_23, %65 : f32
      %68 = arith.addf %66, %67 : f32
      %c0_24 = arith.constant 0 : index
      %69 = memref.load %arg6[%c0_24] : memref<1xf32, #tpu.memory_space<smem>>
      memref.store %68, %arg6[%c0_24] : memref<1xf32, #tpu.memory_space<smem>>
    } else {
    }
    return
  }
  func.func @transform_0(%arg0: i32) -> (i32, i32) {
    %c0_i32 = arith.constant 0 : i32
    %c0_i32_0 = arith.constant 0 : i32
    return %arg0, %c0_i32 : i32, i32
  }
  func.func @transform_1(%arg0: i32) -> (i32, i32) {
    %c0_i32 = arith.constant 0 : i32
    %c0_i32_0 = arith.constant 0 : i32
    %c0_i32_1 = arith.constant 0 : i32
    return %c0_i32, %c0_i32_0 : i32, i32
  }
  func.func @transform_2(%arg0: i32) -> (i32, i32) {
    %c0_i32 = arith.constant 0 : i32
    %c0_i32_0 = arith.constant 0 : i32
    %c0_i32_1 = arith.constant 0 : i32
    return %c0_i32, %c0_i32_0 : i32, i32
  }
  func.func @transform_3(%arg0: i32) -> (i32, i32, i32) {
    %c0_i32 = arith.constant 0 : i32
    %c0_i32_0 = arith.constant 0 : i32
    %c0_i32_1 = arith.constant 0 : i32
    %c0_i32_2 = arith.constant 0 : i32
    return %c0_i32, %c0_i32_0, %c0_i32_1 : i32, i32, i32
  }
  func.func @transform_4(%arg0: i32) -> (i32, i32) {
    %c0_i32 = arith.constant 0 : i32
    %c0_i32_0 = arith.constant 0 : i32
    return %c0_i32, %arg0 : i32, i32
  }
  func.func @transform_5(%arg0: i32) -> i32 {
    %c0_i32 = arith.constant 0 : i32
    %c0_i32_0 = arith.constant 0 : i32
    return %c0_i32 : i32
  }
}

</mosaic_0001>

<bundles_post_ra>
// kernel: tpu_custom_call.1
= control target key start
LH: loop header
LB: loop body
LE: loop exit
PB: predicated region body
PF: predicated region fallthrough
CT: control target
= control target key end

     0   :  { %s3641_s0 = inlined_call_operand.vmem [shape: f32[1536,32], index: 0, kind: input, shape index: {}]   ;;  %s3642_s1 = inlined_call_operand.vmem [shape: f32[1,32], index: 1, kind: input, shape index: {}]   ;;  %s3643_s2 = inlined_call_operand.<no memory space> [shape: f32[1,1], index: 2, kind: input, shape index: {}]   ;;  %s3644_s3 = inlined_call_operand.vmem [shape: f32[2,4,2], index: 3, kind: input, shape index: {}]   ;;  %s3645_s4 = inlined_call_operand.vmem [shape: s32[4,1536], index: 4, kind: input, shape index: {}]   ;;  %s3646_s5 = inlined_call_operand.hbm [shape: f32[1], index: 5, kind: output, shape index: {}]  }
   0x1   :  { %v10_v0 = vstv %s3643_s2 }
   0x2   :  { %11 = vst [vmem:[#allocation3] sm:$0x1] %v10_v0 }
   0x3   :  { %12 = vsyncpa [#allocation5], 0  ;;  %s2377_s20 = smov 0  }
   0x4 LB: > { %s2383_s21 = sadd.s32 4294967295, %s2339_s20   ;;  %p2228_p0 = scmp.ge.s32.totalorder %s2339_s20, 1  ;;  %s2339_s20 = sphi %s2377_s20, %s18_s20  }
   0x5   : > { %p197_p1 = scmp.lt.s32.totalorder %s2339_s20, 4 }
   0x7   : > { %p198_p2 = pnand %p2228_p0, %p197_p1 }
   0x9   : > { %201 = sbr.rel (%p198_p2) target bundleno = 1004 (0x3ec), region = 40 }
   0xe   : > { %v2390_v1 = vld [vmem:[%s3644_s3] sm:$0xf]  ;;  %vm1949_vm0 = vcmask 11264   ;;  %s2229_s23 = sshll.u32 %s2383_s21, 6  ;;  %v2398_v3 = vld [vmem:[%s3644_s3 + $0x4] sm:$0xf] }
   0xf   : > { %v1950_v2 = vsel %vm1949_vm0, %v2390_v1, -inf  ;;  %p226_p3 = scmp.lt.s32.totalorder %s2229_s23, 191  ;;  %vm315_vm1 = vcmask 261120   ;;  %v1953_v4 = vsel %vm1949_vm0, %v2398_v3, -inf  ;;  %s2231_s7 = sshll.u32 %s2383_s21, 2 }
  0x10   : > { %1951 = vmax.xlane.f32.xlu0 %v1950_v2  ;;  %p232_p4 = scmp.lt.s32.totalorder %s2231_s7, 11  ;;  %p2249_p5 = scmp.eq.s32.totalorder %s2383_s21, 0 }
  0x11   : > { %s3749_s23 = smov (!%p226_p3, %s2229_s23), 191  ;;  %s2342_s12 = smov 0.0  }
  0x12   : > { %s2230_s26 = sshll.u32 %s3749_s23, 3  ;;  %s3751_s7 = smov (!%p232_p4, %s2231_s7), 11 }
  0x13   : > { %s2403_s29 = scalar_lea.vmem %s3641_s0, %s2230_s26  ;;  %s2232_s8 = sshll.u32 %s3751_s7, 2 }
  0x14   : > { %v259_v5 = vld [vmem:[%s2403_s29 + $0x78] sm:$0xff]  ;;  %v258_v6 = vld [vmem:[%s2403_s29 + $0x70] sm:$0xff]  ;;  %v257_v7 = vld [vmem:[%s2403_s29 + $0x68] sm:$0xff]  ;;  %s3595_s11 = scalar_lea.vmem %s3645_s4, %s2232_s8  ;;  %2244 = sst [smem:[#allocation2]] (%p2249_p5), %s2342_s12 }
  0x15   : > { %v365_v8 = vsel %vm315_vm1, %v259_v5, 0  ;;  %v362_v9 = vsel %vm315_vm1, %v258_v6, 0  ;;  %v359_v10 = vsel %vm315_vm1, %v257_v7, 0  ;;  %v256_v11 = vld [vmem:[%s2403_s29 + $0x60] sm:$0xff]  ;;  %v255_v12 = vld [vmem:[%s2403_s29 + $0x58] sm:$0xff]  ;;  %v254_v22 = vld [vmem:[%s2403_s29 + $0x50] sm:$0xff] }
  0x16   : > { %v2415_v13 = vand.u32 4294901760, %v365_v8  ;;  %v2417_v14 = vand.u32 4294901760, %v362_v9  ;;  %v2419_v15 = vand.u32 4294901760, %v359_v10  ;;  %v356_v16 = vsel %vm315_vm1, %v256_v11, 0  ;;  %v253_v31 = vld [vmem:[%s2403_s29 + $0x48] sm:$0xff]  ;;  %v252_v39 = vld [vmem:[%s2403_s29 + $0x40] sm:$0xff] }
  0x17   : > { %v2422_v17 = vand.u32 4294901760, %v356_v16  ;;  %v353_v21 = vsel %vm315_vm1, %v255_v12, 0  ;;  %v350_v26 = vsel %vm315_vm1, %v254_v22, 0  ;;  %v347_v34 = vsel %vm315_vm1, %v253_v31, 0  ;;  %v251_v46 = vld [vmem:[%s2403_s29 + $0x38] sm:$0xff]  ;;  %v250_v53 = vld [vmem:[%s2403_s29 + $0x30] sm:$0xff] }
  0x18   : > { %1954 = vmax.xlane.f32.xlu0 %v1953_v4  ;;  %512 = vmatpush.xpose.msra.mxu0 %v2415_v13  ;;  %v2426_v18 = vsub.f32 %v365_v8, %v2415_v13  ;;  %v2430_v19 = vsub.f32 %v362_v9, %v2417_v14  ;;  %v2433_v20 = vsub.f32 %v359_v10, %v2419_v15  ;;  %v2440_v25 = vand.u32 4294901760, %v353_v21  ;;  %v249_v60 = vld [vmem:[%s2403_s29 + $0x28] sm:$0xff]  ;;  %v248_v5 = vld [vmem:[%s2403_s29 + $0x20] sm:$0xff]  ;;  %v247_v12 = vld [vmem:[%s2403_s29 + $0x18] sm:$0xff]  ;;  %s2111_s13 = sld [smem:[#allocation2]]  ;;  %p2234_p6 = scmp.ne.s32.totalorder %s2383_s21, 2 }
  0x19   : > { %708 = vmatpush.xpose.msra.mxu3 %v2415_v13  ;;  %v2453_v30 = vsub.f32 %v356_v16, %v2422_v17  ;;  %v2457_v33 = vand.u32 4294901760, %v350_v26  ;;  %v2471_v40 = vand.u32 4294901760, %v347_v34  ;;  %v344_v41 = vsel %vm315_vm1, %v252_v39, 0  ;;  %v246_v31 = vld [vmem:[%s2403_s29 + $0x10] sm:$0xff] }
  0x1a   : > { %655 = vmatpush.xpose.msra.mxu2 %v2426_v18  ;;  %v554_v23 = vand.u32 4294901760, %v2426_v18  ;;  %v560_v24 = vand.u32 4294901760, %v2430_v19  ;;  %v566_v29 = vand.u32 4294901760, %v2433_v20  ;;  %v2466_v38 = vsub.f32 %v353_v21, %v2440_v25 }
  0x1b   : > { %v572_v37 = vand.u32 4294901760, %v2453_v30  ;;  %v2480_v45 = vsub.f32 %v350_v26, %v2457_v33  ;;  %v2486_v47 = vsub.f32 %v347_v34, %v2471_v40  ;;  %v2488_v48 = vand.u32 4294901760, %v344_v41 }
  0x1c   : > { %514 = vmatpush.xpose.msra.mxu0 %v2417_v14  ;;  %v555_v27 = vsub.f32 %v2426_v18, %v554_v23  ;;  %v561_v28 = vsub.f32 %v2430_v19, %v560_v24  ;;  %v567_v36 = vsub.f32 %v2433_v20, %v566_v29  ;;  %v578_v44 = vand.u32 4294901760, %v2466_v38 }
  0x1d   : > { %710 = vmatpush.xpose.msra.mxu3 %v2417_v14  ;;  %v573_v43 = vsub.f32 %v2453_v30, %v572_v37  ;;  %v584_v51 = vand.u32 4294901760, %v2480_v45  ;;  %v341_v52 = vsel %vm315_vm1, %v251_v46, 0  ;;  %v590_v54 = vand.u32 4294901760, %v2486_v47 }
  0x1e   : > { %v556_v32 = vand.u32 4294901760, %v555_v27  ;;  %658 = vmatpush.xpose.msra.mxu2 %v2430_v19  ;;  %v562_v35 = vand.u32 4294901760, %v561_v28  ;;  %v568_v42 = vand.u32 4294901760, %v567_v36  ;;  %v579_v50 = vsub.f32 %v2466_v38, %v578_v44  ;;  %v267_v19 = vld [vmem:[%s2403_s29 + $0xb8] sm:$0xff] }
  0x1f   : > { %v574_v49 = vand.u32 4294901760, %v573_v43  ;;  %v2501_v55 = vsub.f32 %v344_v41, %v2488_v48  ;;  %v585_v57 = vsub.f32 %v2480_v45, %v584_v51  ;;  %v2507_v58 = vand.u32 4294901760, %v341_v52  ;;  %v275_v41 = vld [vmem:[%s2403_s29 + $0xf8] sm:$0xff]  ;;  %v245_v43 = vld [vmem:[%s2403_s29 + $0x8] sm:$0xff] }
  0x20   : > { %557 = vmatpush.xpose.msra.mxu1 %v556_v32  ;;  %516 = vmatpush.xpose.msra.mxu0 %v2419_v15  ;;  %v580_v56 = vand.u32 4294901760, %v579_v50  ;;  %v338_v59 = vsel %vm315_vm1, %v250_v53, 0  ;;  %v591_v61 = vsub.f32 %v2486_v47, %v590_v54  ;;  %v335_v4 = vsel %vm315_vm1, %v249_v60, 0  ;;  %v274_v50 = vld [vmem:[%s2403_s29 + $0xf0] sm:$0xff]  ;;  %v244_v60 = vld [vmem:[%s2403_s29] sm:$0xff] }
  0x21   : > { %712 = vmatpush.xpose.msra.mxu3 %v2419_v15  ;;  %v3655_v62 = vand.u32 4294901760, %v2501_v55  ;;  %v586_v63 = vand.u32 4294901760, %v585_v57  ;;  %v2519_v0 = vsub.f32 %v341_v52, %v2507_v58  ;;  %v2521_v2 = vand.u32 4294901760, %v338_v59 }
  0x22   : > { %661 = vmatpush.xpose.msra.mxu2 %v2433_v20  ;;  %v592_v6 = vand.u32 4294901760, %v591_v61  ;;  %v2535_v10 = vand.u32 4294901760, %v335_v4  ;;  %v332_v11 = vsel %vm315_vm1, %v248_v5, 0  ;;  %v329_v28 = vsel %vm315_vm1, %v247_v12, 0  ;;  %v273_v5 = vld [vmem:[%s2403_s29 + $0xe8] sm:$0xff] }
  0x23   : > { %v597_v7 = vsub.f32 %v2501_v55, %v3655_v62  ;;  %v3654_v8 = vand.u32 4294901760, %v2519_v0  ;;  %v2533_v9 = vsub.f32 %v338_v59, %v2521_v2  ;;  %v2541_v16 = vand.u32 4294901760, %v332_v11 }
  0x24   : > { %563 = vmatpush.xpose.msra.mxu1 %v562_v35  ;;  %518 = vmatpush.xpose.msra.mxu0 %v2422_v17  ;;  %v2549_v27 = vsub.f32 %v335_v4, %v2535_v10  ;;  %v2563_v39 = vand.u32 4294901760, %v329_v28  ;;  %v323_v59 = vsel %vm315_vm1, %v245_v43, 0 }
  0x25   : > { %714 = vmatpush.xpose.msra.mxu3 %v2422_v17  ;;  %v598_v21 = vand.u32 4294901760, %v597_v7  ;;  %v603_v22 = vsub.f32 %v2519_v0, %v3654_v8  ;;  %v3652_v26 = vand.u32 4294901760, %v2533_v9  ;;  %v2556_v32 = vsub.f32 %v332_v11, %v2541_v16  ;;  %v269_v8 = vld [vmem:[%s2403_s29 + $0xc8] sm:$0xff] }
  0x26   : > { %664 = vmatpush.xpose.msra.mxu2 %v2453_v30  ;;  %v3650_v36 = vand.u32 4294901760, %v2549_v27  ;;  %v2598_v12 = vand.u32 4294901760, %v323_v59  ;;  %v395_v18 = vsel %vm315_vm1, %v269_v8, 0  ;;  %v265_v30 = vld [vmem:[%s2403_s29 + $0xa8] sm:$0xff] }
  0x27   : > { %v604_v34 = vand.u32 4294901760, %v603_v22  ;;  %v609_v35 = vsub.f32 %v2533_v9, %v3652_v26  ;;  %v3649_v46 = vand.u32 4294901760, %v2556_v32 }
  0x28   : > { %569 = vmatpush.xpose.msra.mxu1 %v568_v42  ;;  %520 = vmatpush.xpose.msra.mxu0 %v2440_v25  ;;  %v326_v42 = vsel %vm315_vm1, %v246_v31, 0  ;;  %v615_v53 = vsub.f32 %v2549_v27, %v3650_v36  ;;  %v407_v31 = vsel %vm315_vm1, %v273_v5, 0  ;;  %v270_v36 = vld [vmem:[%s2403_s29 + $0xd0] sm:$0xff] }
  0x29   : > { %716 = vmatpush.xpose.msra.mxu3 %v2440_v25  ;;  %v610_v52 = vand.u32 4294901760, %v609_v35  ;;  %v2580_v57 = vand.u32 4294901760, %v326_v42  ;;  %v621_v4 = vsub.f32 %v2556_v32, %v3649_v46 }
  0x2a   : > { %667 = vmatpush.xpose.msra.mxu2 %v2466_v38  ;;  %v383_v38 = vsel %vm315_vm1, %v265_v30, 0 }
  0x2b   : > { %v2596_v11 = vsub.f32 %v326_v42, %v2580_v57  ;;  %v2615_v42 = vsub.f32 %v323_v59, %v2598_v12 }
  0x2c   : > { %575 = vmatpush.xpose.msra.mxu1 %v574_v49  ;;  %522 = vmatpush.xpose.msra.mxu0 %v2457_v33  ;;  %v413_v49 = vsel %vm315_vm1, %v275_v41, 0 }
  0x2d   : > { %718 = vmatpush.xpose.msra.mxu3 %v2457_v33  ;;  %v2586_v61 = vand.u32 4294901760, %v413_v49  ;;  %v3648_v41 = vand.u32 4294901760, %v2596_v11 }
  0x2e   : > { %670 = vmatpush.xpose.msra.mxu2 %v2480_v45  ;;  %v263_v45 = vld [vmem:[%s2403_s29 + $0x98] sm:$0xff] }
  0x30   : > { %581 = vmatpush.xpose.msra.mxu1 %v580_v56  ;;  %524 = vmatpush.xpose.msra.mxu0 %v2471_v40  ;;  %v2578_v56 = vsub.f32 %v329_v28, %v2563_v39  ;;  %v2606_v28 = vsub.f32 %v413_v49, %v2586_v61  ;;  %v272_v49 = vld [vmem:[%s2403_s29 + $0xe0] sm:$0xff] }
  0x31   : > { %720 = vmatpush.xpose.msra.mxu3 %v2471_v40 }
  0x32   : > { %673 = vmatpush.xpose.msra.mxu2 %v2486_v47  ;;  %v3647_v7 = vand.u32 4294901760, %v2578_v56  ;;  %v262_v47 = vld [vmem:[%s2403_s29 + $0x90] sm:$0xff] }
  0x34   : > { %587 = vmatpush.xpose.msra.mxu1 %v586_v63  ;;  %526 = vmatpush.xpose.msra.mxu0 %v2488_v48  ;;  %v410_v63 = vsel %vm315_vm1, %v274_v50, 0  ;;  %v627_v35 = vsub.f32 %v2578_v56, %v3647_v7 }
  0x35   : > { %722 = vmatpush.xpose.msra.mxu3 %v2488_v48  ;;  %v2602_v22 = vand.u32 4294901760, %v410_v63 }
  0x36   : > { %676 = vmatpush.xpose.msra.mxu2 %v2501_v55  ;;  %v628_v59 = vand.u32 4294901760, %v627_v35 }
  0x37   : > { %v2622_v50 = vsub.f32 %v410_v63, %v2602_v22  ;;  %v3653_v63 = vand.u32 4294901760, %v2615_v42 }
  0x38   : > { %593 = vmatpush.xpose.msra.mxu1 %v592_v6  ;;  %528 = vmatpush.xpose.msra.mxu0 %v2507_v58  ;;  %v616_v6 = vand.u32 4294901760, %v615_v53  ;;  %v3651_v53 = vand.u32 4294901760, %v2606_v28 }
  0x39   : > { %724 = vmatpush.xpose.msra.mxu3 %v2507_v58  ;;  %v3656_v7 = vand.u32 4294901760, %v2622_v50 }
  0x3a   : > { %679 = vmatpush.xpose.msra.mxu2 %v2519_v0  ;;  %v896_v35 = vsub.f32 %v2606_v28, %v3651_v53 }
  0x3b   : > { %v902_v53 = vsub.f32 %v2622_v50, %v3656_v7 }
  0x3c   : > { %599 = vmatpush.xpose.msra.mxu1 %v598_v21  ;;  %530 = vmatpush.xpose.msra.mxu0 %v2521_v2  ;;  %v320_v21 = vsel %vm315_vm1, %v244_v60, 0  ;;  %v404_v60 = vsel %vm315_vm1, %v272_v49, 0 }
  0x3d   : > { %726 = vmatpush.xpose.msra.mxu3 %v2521_v2  ;;  %v2617_v43 = vand.u32 4294901760, %v320_v21  ;;  %v2647_v49 = vand.u32 4294901760, %v404_v60 }
  0x3e   : > { %682 = vmatpush.xpose.msra.mxu2 %v2533_v9 }
  0x3f   : > { %v2635_v5 = vsub.f32 %v320_v21, %v2617_v43 }
  0x40   : > { %605 = vmatpush.xpose.msra.mxu1 %v604_v34  ;;  %532 = vmatpush.xpose.msra.mxu0 %v2535_v10  ;;  %v622_v34 = vand.u32 4294901760, %v621_v4  ;;  %v633_v4 = vsub.f32 %v2596_v11, %v3648_v41 }
  0x41   : > { %728 = vmatpush.xpose.msra.mxu3 %v2535_v10  ;;  %v3658_v46 = vand.u32 4294901760, %v2635_v5 }
  0x42   : > { %685 = vmatpush.xpose.msra.mxu2 %v2549_v27  ;;  %v634_v41 = vand.u32 4294901760, %v633_v4  ;;  %v2663_v4 = vsub.f32 %v404_v60, %v2647_v49  ;;  %v903_v60 = vand.u32 4294901760, %v902_v53 }
  0x43   : > { %v645_v7 = vsub.f32 %v2635_v5, %v3658_v46 }
  0x44   : > { %611 = vmatpush.xpose.msra.mxu1 %v610_v52  ;;  %534 = vmatpush.xpose.msra.mxu0 %v2541_v16  ;;  %v2624_v52 = vand.u32 4294901760, %v407_v31 }
  0x45   : > { %730 = vmatpush.xpose.msra.mxu3 %v2541_v16  ;;  %v646_v53 = vand.u32 4294901760, %v645_v7 }
  0x46   : > { %688 = vmatpush.xpose.msra.mxu2 %v2556_v32 }
  0x48   : > { %617 = vmatpush.xpose.msra.mxu1 %v616_v6  ;;  %536 = vmatpush.xpose.msra.mxu0 %v2563_v39  ;;  %v271_v6 = vld [vmem:[%s2403_s29 + $0xd8] sm:$0xff] }
  0x49   : > { %732 = vmatpush.xpose.msra.mxu3 %v2563_v39  ;;  %v401_v21 = vsel %vm315_vm1, %v271_v6, 0 }
  0x4a   : > { %691 = vmatpush.xpose.msra.mxu2 %v2578_v56  ;;  %v2665_v6 = vand.u32 4294901760, %v401_v21 }
  0x4c   : > { %623 = vmatpush.xpose.msra.mxu1 %v622_v34  ;;  %538 = vmatpush.xpose.msra.mxu0 %v2580_v57  ;;  %v2641_v34 = vsub.f32 %v407_v31, %v2624_v52  ;;  %v639_v31 = vsub.f32 %v2615_v42, %v3653_v63  ;;  %v398_v63 = vsel %vm315_vm1, %v270_v36, 0 }
  0x4d   : > { %734 = vmatpush.xpose.msra.mxu3 %v2580_v57 }
  0x4e   : > { %694 = vmatpush.xpose.msra.mxu2 %v2596_v11  ;;  %v3657_v26 = vand.u32 4294901760, %v2641_v34  ;;  %v640_v62 = vand.u32 4294901760, %v639_v31  ;;  %v2684_v31 = vand.u32 4294901760, %v398_v63 }
  0x50   : > { %629 = vmatpush.xpose.msra.mxu1 %v628_v59  ;;  %540 = vmatpush.xpose.msra.mxu0 %v2598_v12  ;;  %v897_v59 = vand.u32 4294901760, %v896_v35  ;;  %v908_v36 = vsub.f32 %v2641_v34, %v3657_v26  ;;  %v2682_v35 = vsub.f32 %v401_v21, %v2665_v6  ;;  %v2698_v8 = vsub.f32 %v398_v63, %v2684_v31 }
  0x51   : > { %736 = vmatpush.xpose.msra.mxu3 %v2598_v12 }
  0x52   : > { %697 = vmatpush.xpose.msra.mxu2 %v2615_v42  ;;  %v909_v26 = vand.u32 4294901760, %v908_v36  ;;  %v919_v46 = vand.u32 4294901760, %v2682_v35  ;;  %v3662_v36 = vand.u32 4294901760, %v2698_v8 }
  0x54   : > { %635 = vmatpush.xpose.msra.mxu1 %v634_v41  ;;  %542 = vmatpush.xpose.msra.mxu0 %v2617_v43  ;;  %v913_v41 = vand.u32 4294901760, %v2663_v4  ;;  %v920_v63 = vsub.f32 %v2682_v35, %v919_v46 }
  0x55   : > { %738 = vmatpush.xpose.msra.mxu3 %v2617_v43 }
  0x56   : > { %700 = vmatpush.xpose.msra.mxu2 %v2635_v5  ;;  %v914_v21 = vsub.f32 %v2663_v4, %v913_v41 }
  0x58   : > { %749 = vmatpush.xpose.msrb.mxu0 %v554_v23  ;;  %v268_v23 = vld [vmem:[%s2403_s29 + $0xc0] sm:$0xff]  ;;  %641 = vmatpush.xpose.msra.mxu1 %v640_v62 }
  0x59   : > { %898 = vmatpush.xpose.msrb.mxu3 %v897_v59  ;;  %v2691_v59 = vand.u32 4294901760, %v395_v18  ;;  %v392_v62 = vsel %vm315_vm1, %v268_v23, 0  ;;  %v389_v23 = vsel %vm315_vm1, %v267_v19, 0 }
  0x5a   : > { %853 = vmatpush.xpose.msrb.mxu2 %v2586_v61  ;;  %v2709_v7 = vand.u32 4294901760, %v392_v62 }
  0x5c   : > { %753 = vmatpush.xpose.msrb.mxu0 %v560_v24  ;;  %647 = vmatpush.xpose.msra.mxu1 %v646_v53  ;;  %v2707_v24 = vsub.f32 %v395_v18, %v2691_v59  ;;  %v921_v18 = vand.u32 4294901760, %v920_v63  ;;  %v926_v53 = vsub.f32 %v2698_v8, %v3662_v36 }
  0x5d   : > { %904 = vmatpush.xpose.msrb.mxu3 %v903_v60  ;;  %v915_v60 = vand.u32 4294901760, %v914_v21 }
  0x5e   : > { %855 = vmatpush.xpose.msrb.mxu2 %v2602_v22  ;;  %v3659_v20 = vand.u32 4294901760, %v2707_v24  ;;  %v927_v19 = vand.u32 4294901760, %v926_v53 }
  0x60   : > { %816 = vmatpush.xpose.msrb.mxu1 %v2415_v13  ;;  %757 = vmatpush.xpose.msrb.mxu0 %v566_v29  ;;  %v266_v13 = vld [vmem:[%s2403_s29 + $0xb0] sm:$0xff]  ;;  %v2723_v29 = vsub.f32 %v392_v62, %v2709_v7 }
  0x61   : > { %910 = vmatpush.xpose.msrb.mxu3 %v909_v26  ;;  %v2725_v26 = vand.u32 4294901760, %v389_v23 }
  0x62   : > { %857 = vmatpush.xpose.msrb.mxu2 %v2624_v52  ;;  %v3660_v21 = vand.u32 4294901760, %v2723_v29 }
  0x63   : > { %v2741_v62 = vsub.f32 %v389_v23, %v2725_v26 }
  0x64   : > { %818 = vmatpush.xpose.msrb.mxu1 %v2417_v14  ;;  %761 = vmatpush.xpose.msrb.mxu0 %v572_v37  ;;  %v386_v14 = vsel %vm315_vm1, %v266_v13, 0  ;;  %v932_v37 = vsub.f32 %v2707_v24, %v3659_v20  ;;  %v2764_v20 = vand.u32 4294901760, %v383_v38 }
  0x65   : > { %916 = vmatpush.xpose.msrb.mxu3 %v915_v60  ;;  %v2743_v60 = vand.u32 4294901760, %v386_v14  ;;  %v3661_v53 = vand.u32 4294901760, %v2741_v62 }
  0x66   : > { %859 = vmatpush.xpose.msrb.mxu2 %v2647_v49  ;;  %v933_v23 = vand.u32 4294901760, %v932_v37 }
  0x67   : > { %v2762_v30 = vsub.f32 %v386_v14, %v2743_v60 }
  0x68   : > { %820 = vmatpush.xpose.msrb.mxu1 %v2419_v15  ;;  %765 = vmatpush.xpose.msrb.mxu0 %v578_v44  ;;  %v243_v15 = vld [vmem:[%s3642_s1] sm:$0x1] }
  0x69   : > { %922 = vmatpush.xpose.msrb.mxu3 %v921_v18  ;;  %v264_v44 = vld [vmem:[%s2403_s29 + $0xa0] sm:$0xff]  ;;  %v317_v63 = vsel %vm315_vm1, %v243_v15, 0  ;;  %v938_v18 = vsub.f32 %v2723_v29, %v3660_v21 }
  0x6a   : > { %861 = vmatpush.xpose.msrb.mxu2 %v2665_v6  ;;  %v2752_v13 = vand.u32 4294901760, %v317_v63  ;;  %v380_v15 = vsel %vm315_vm1, %v264_v44, 0  ;;  %v3663_v44 = vand.u32 4294901760, %v2762_v30 }
  0x6b   : > { %v939_v14 = vand.u32 4294901760, %v938_v18  ;;  %v2780_v37 = vand.u32 4294901760, %v380_v15 }
  0x6c   : > { %822 = vmatpush.xpose.msrb.mxu1 %v2422_v17  ;;  %769 = vmatpush.xpose.msrb.mxu0 %v584_v51  ;;  %v2768_v17 = vsub.f32 %v317_v63, %v2752_v13  ;;  %v2787_v63 = vsub.f32 %v383_v38, %v2764_v20 }
  0x6d   : > { %928 = vmatpush.xpose.msrb.mxu3 %v927_v19  ;;  %649 = vmatmul.f32.vlgmr.msra.gmra.mxu1 %v2752_v13  ;;  %v944_v19 = vsub.f32 %v2741_v62, %v3661_v53  ;;  %v2801_v38 = vsub.f32 %v380_v15, %v2780_v37  ;;  %v950_v53 = vsub.f32 %v2762_v30, %v3663_v44 }
  0x6e   : > { %863 = vmatpush.xpose.msrb.mxu2 %v2684_v31  ;;  %v2775_v51 = vand.u32 4294901760, %v2768_v17 }
  0x6f   : > { %703 = vmatmul.f32.vlgmr.msra.gmra.mxu2 %v2768_v17  ;;  %v945_v18 = vand.u32 4294901760, %v944_v19  ;;  %v961_v15 = vand.u32 4294901760, %v2801_v38 }
  0x70   : > { %3690 = vst [vmem:[#allocation7_spill] sm:$0xff] %v2775_v51  ;;  %824 = vmatpush.xpose.msrb.mxu1 %v2440_v25  ;;  %773 = vmatpush.xpose.msrb.mxu0 %v590_v54  ;;  %v546_v21 = vsub.f32 %v2768_v17, %v2775_v51  ;;  %v377_v25 = vsel %vm315_vm1, %v263_v45, 0  ;;  %v3664_v45 = vand.u32 4294901760, %v2787_v63 }
  0x71   : > { %934 = vmatpush.xpose.msrb.mxu3 %v933_v23  ;;  %v3691_v23 = vand.u32 4294901760, %v2501_v55  ;;  %v2807_v36 = vand.u32 4294901760, %v377_v25  ;;  %v261_v55 = vld [vmem:[%s2403_s29 + $0x88] sm:$0xff] }
  0x72   : > { %865 = vmatpush.xpose.msrb.mxu2 %v2691_v59  ;;  %742 = vmatmul.f32.vlgmr.msra.gmra.mxu3 %v2775_v51  ;;  %v2795_v54 = vand.u32 4294901760, %v546_v21  ;;  %v3692_v21 = vand.u32 4294901760, %v2519_v0  ;;  %v956_v19 = vsub.f32 %v2787_v63, %v3664_v45  ;;  %v3693_v0 = vand.u32 4294901760, %v2533_v9 }
  0x73   : > { %v3694_v9 = vand.u32 4294901760, %v2549_v27 }
  0x74   : > { %826 = vmatpush.xpose.msrb.mxu1 %v2457_v33  ;;  %777 = vmatpush.xpose.msrb.mxu0 %v3691_v23  ;;  %v374_v33 = vsel %vm315_vm1, %v262_v47, 0  ;;  %v2821_v23 = vsub.f32 %v377_v25, %v2807_v36  ;;  %v260_v47 = vld [vmem:[%s2403_s29 + $0x80] sm:$0xff] }
  0x75   : > { %940 = vmatpush.xpose.msrb.mxu3 %v939_v14  ;;  %548 = vmatmul.f32.vlgmr.msra.gmra.mxu0 %v2795_v54  ;;  %v951_v14 = vand.u32 4294901760, %v950_v53  ;;  %v2823_v44 = vand.u32 4294901760, %v374_v33  ;;  %v962_v53 = vsub.f32 %v2801_v38, %v961_v15 }
  0x76   : > { %867 = vmatpush.xpose.msrb.mxu2 %v2709_v7  ;;  %v967_v25 = vand.u32 4294901760, %v2821_v23 }
  0x78   : > { %828 = vmatpush.xpose.msrb.mxu1 %v2471_v40  ;;  %781 = vmatpush.xpose.msrb.mxu0 %v3692_v21  ;;  %v371_v40 = vsel %vm315_vm1, %v261_v55, 0  ;;  %v2836_v21 = vsub.f32 %v374_v33, %v2823_v44  ;;  %v963_v55 = vand.u32 4294901760, %v962_v53 }
  0x79   : > { %946 = vmatpush.xpose.msrb.mxu3 %v945_v18  ;;  %v957_v18 = vand.u32 4294901760, %v956_v19  ;;  %v2838_v45 = vand.u32 4294901760, %v371_v40 }
  0x7a   : > { %869 = vmatpush.xpose.msrb.mxu2 %v2725_v26  ;;  %v973_v33 = vand.u32 4294901760, %v2836_v21 }
  0x7b   : > { %v2850_v19 = vsub.f32 %v371_v40, %v2838_v45 }
  0x7c   : > { %830 = vmatpush.xpose.msrb.mxu1 %v2488_v48  ;;  %785 = vmatpush.xpose.msrb.mxu0 %v3693_v0  ;;  %v368_v48 = vsel %vm315_vm1, %v260_v47, 0  ;;  %v974_v53 = vsub.f32 %v2836_v21, %v973_v33 }
  0x7d   : > { %952 = vmatpush.xpose.msrb.mxu3 %v951_v14  ;;  %v968_v14 = vsub.f32 %v2821_v23, %v967_v25  ;;  %v2852_v0 = vand.u32 4294901760, %v368_v48 }
  0x7e   : > { %871 = vmatpush.xpose.msrb.mxu2 %v2743_v60 }
  0x7f   : > { %v969_v47 = vand.u32 4294901760, %v968_v14  ;;  %v2863_v40 = vsub.f32 %v368_v48, %v2852_v0 }
  0x80   : > { %832 = vmatpush.xpose.msrb.mxu1 %v2507_v58  ;;  %789 = vmatpush.xpose.msrb.mxu0 %v3694_v9  ;;  %v3695_v58 = vand.u32 4294901760, %v2556_v32  ;;  %v3696_v32 = vand.u32 4294901760, %v2578_v56 }
  0x81   : > { %958 = vmatpush.xpose.msrb.mxu3 %v957_v18  ;;  %v979_v18 = vand.u32 4294901760, %v2850_v19 }
  0x82   : > { %873 = vmatpush.xpose.msrb.mxu2 %v2764_v20 }
  0x83   : > { %v1952_v27 = vpop.xlane.xlu0 %1951  ;;  %v980_v14 = vsub.f32 %v2850_v19, %v979_v18 }
  0x84   : > { %834 = vmatpush.xpose.msrb.mxu1 %v2521_v2  ;;  %793 = vmatpush.xpose.msrb.mxu0 %v3695_v58  ;;  %v1956_v9 = vsub.f32 %v2390_v1, %v1952_v27  ;;  %v985_v58 = vand.u32 4294901760, %v2863_v40  ;;  %v3697_v1 = vand.u32 4294901760, %v2596_v11 }
  0x85   : > { %964 = vmatpush.xpose.msrb.mxu3 %v963_v55  ;;  %v975_v55 = vand.u32 4294901760, %v974_v53  ;;  %v981_v56 = vand.u32 4294901760, %v980_v14 }
  0x86   : > { %875 = vmatpush.xpose.msrb.mxu2 %v2780_v37  ;;  %v1958_v2 = vmul.f32 1.442695, %v1956_v9  ;;  %v986_v48 = vsub.f32 %v2863_v40, %v985_v58 }
  0x88   : > { %836 = vmatpush.xpose.msrb.mxu1 %v2535_v10  ;;  %797 = vmatpush.xpose.msrb.mxu0 %v3696_v32  ;;  %2265 = vpow2.f32 %v1958_v2  ;;  %v987_v9 = vand.u32 4294901760, %v986_v48  ;;  %v3699_v2 = vand.u32 4294901760, %v2635_v5  ;;  %v291_v5 = vld [vmem:[%s2403_s29 + $0x178] sm:$0xff] }
  0x89   : > { %970 = vmatpush.xpose.msrb.mxu3 %v969_v47 }
  0x8a   : > { %877 = vmatpush.xpose.msrb.mxu2 %v2807_v36 }
  0x8b   : > { %v1955_v10 = vpop.xlane.xlu0 %1954 }
  0x8c   : > { %838 = vmatpush.xpose.msrb.mxu1 %v2541_v16  ;;  %801 = vmatpush.xpose.msrb.mxu0 %v3697_v1  ;;  %v1957_v27 = vsub.f32 %v2398_v3, %v1955_v10  ;;  %v3698_v16 = vand.u32 4294901760, %v2615_v42  ;;  %v2341_v3 = vmov 0   ;;  %v3700_v42 = vand.u32 4294901760, %v2606_v28 }
  0x8d   : > { %976 = vmatpush.xpose.msrb.mxu3 %v975_v55  ;;  %2263 = vset.pattern.permute.xlu2 %v2341_v3 }
  0x8e   : > { %879 = vmatpush.xpose.msrb.mxu2 %v2823_v44  ;;  %v2883_v47 = vpop.eup %2265  ;;  %v1960_v53 = vmul.f32 1.442695, %v1957_v27  ;;  %2264 = vset.pattern.permute.xlu0 %v2341_v3 }
  0x8f   : > { %v1962_v11 = vsel %vm1949_vm0, %v2883_v47, 0.0 }
  0x90   : > { %840 = vmatpush.xpose.msrb.mxu1 %v2563_v39  ;;  %805 = vmatpush.xpose.msrb.mxu0 %v3698_v16  ;;  %2267 = vpow2.f32 %v1960_v53  ;;  %v308_v39 = vld [vmem:[#allocation3] sm:$0x1]  ;;  %v283_v53 = vld [vmem:[%s2403_s29 + $0x138] sm:$0xff] }
  0x91   : > { %982 = vmatpush.xpose.msrb.mxu3 %v981_v56  ;;  %1963 = vadd.xlane.f32.xlu1 %v1962_v11 }
  0x92   : > { %881 = vmatpush.xpose.msrb.mxu2 %v2838_v45  ;;  %311 = vperm.xlu2 %2263, %v308_v39   ;;  %v437_v39 = vsel %vm315_vm1, %v283_v53, 0 }
  0x94   : > { %842 = vmatpush.xpose.msrb.mxu1 %v2580_v57  ;;  %809 = vmatpush.xpose.msrb.mxu0 %v3699_v2 }
  0x95   : > { %988 = vmatpush.xpose.msrb.mxu3 %v987_v9 }
  0x96   : > { %883 = vmatpush.xpose.msrb.mxu2 %v2852_v0  ;;  %v2900_v32 = vpop.eup %2267 }
  0x97   : > { %811 = vmatmul.f32.vlgmr.msrb.gmra.mxu0 %v2752_v13  ;;  %v1965_v57 = vsel %vm1949_vm0, %v2900_v32, 0.0 }
  0x98   : > { %996 = vmatpush.xpose.msra.mxu0 %v2606_v28  ;;  %844 = vmatpush.xpose.msrb.mxu1 %v2598_v12  ;;  %v3701_v28 = vand.u32 4294901760, %v2622_v50  ;;  %v3702_v12 = vand.u32 4294901760, %v2641_v34 }
  0x99   : > { %1157 = vmatpush.xpose.msra.mxu3 %v2586_v61  ;;  %889 = vmatmul.f32.vlgmr.msrb.gmra.mxu2 %v2795_v54 }
  0x9a   : > { %1090 = vmatpush.xpose.msra.mxu2 %v3700_v42  ;;  %1966 = vadd.xlane.f32.xlu1 %v1965_v57  ;;  %v282_v42 = vld [vmem:[%s2403_s29 + $0x130] sm:$0xff] }
  0x9b   : > { %990 = vmatmul.f32.vlgmr.msrb.gmra.mxu3 %v2752_v13 }
  0x9c   : > { %999 = vmatpush.xpose.msra.mxu0 %v2622_v50  ;;  %846 = vmatpush.xpose.msrb.mxu1 %v2617_v43  ;;  %v3706_v43 = vand.u32 4294901760, %v2741_v62  ;;  %v3707_v50 = vand.u32 4294901760, %v2762_v30 }
  0x9d   : > { %1159 = vmatpush.xpose.msra.mxu3 %v2602_v22 }
  0x9e   : > { %1094 = vmatpush.xpose.msra.mxu2 %v3701_v28 }
  0x9f   : > { %848 = vmatmul.f32.vlgmr.msrb.gmra.mxu1 %v2752_v13 }
  0xa0   : > { %1049 = vmatpush.xpose.msra.mxu1 %v2586_v61  ;;  %1002 = vmatpush.xpose.msra.mxu0 %v2641_v34  ;;  %v3703_v61 = vand.u32 4294901760, %v2698_v8  ;;  %v461_v34 = vsel %vm315_vm1, %v291_v5, 0 }
  0xa1   : > { %1161 = vmatpush.xpose.msra.mxu3 %v2624_v52 }
  0xa2   : > { %1098 = vmatpush.xpose.msra.mxu2 %v3702_v12 }
  0xa4   : > { %1051 = vmatpush.xpose.msra.mxu1 %v2602_v22  ;;  %1005 = vmatpush.xpose.msra.mxu0 %v2663_v4  ;;  %v3704_v22 = vand.u32 4294901760, %v2707_v24  ;;  %v2968_v4 = vand.u32 4294901760, %v461_v34 }
  0xa5   : > { %1163 = vmatpush.xpose.msra.mxu3 %v2647_v49 }
  0xa6   : > { %1102 = vmatpush.xpose.msra.mxu2 %v913_v41  ;;  %v289_v41 = vld [vmem:[%s2403_s29 + $0x168] sm:$0xff] }
  0xa8   : > { %1053 = vmatpush.xpose.msra.mxu1 %v2624_v52  ;;  %1008 = vmatpush.xpose.msra.mxu0 %v2682_v35  ;;  %v3708_v52 = vand.u32 4294901760, %v2787_v63  ;;  %v2978_v35 = vsub.f32 %v461_v34, %v2968_v4 }
  0xa9   : > { %1165 = vmatpush.xpose.msra.mxu3 %v2665_v6 }
  0xaa   : > { %1106 = vmatpush.xpose.msra.mxu2 %v919_v46  ;;  %v3705_v46 = vand.u32 4294901760, %v2723_v29 }
  0xac   : > { %1055 = vmatpush.xpose.msra.mxu1 %v2647_v49  ;;  %1011 = vmatpush.xpose.msra.mxu0 %v2698_v8  ;;  %v290_v49 = vld [vmem:[%s2403_s29 + $0x170] sm:$0xff]  ;;  %v288_v8 = vld [vmem:[%s2403_s29 + $0x160] sm:$0xff] }
  0xad   : > { %1167 = vmatpush.xpose.msra.mxu3 %v2684_v31 }
  0xae   : > { %1110 = vmatpush.xpose.msra.mxu2 %v3703_v61 }
  0xb0   : > { %1057 = vmatpush.xpose.msra.mxu1 %v2665_v6  ;;  %1014 = vmatpush.xpose.msra.mxu0 %v2707_v24  ;;  %v458_v6 = vsel %vm315_vm1, %v290_v49, 0  ;;  %v3681_v24 = vand.u32 4294901760, %v2978_v35 }
  0xb1   : > { %1169 = vmatpush.xpose.msra.mxu3 %v2691_v59 }
  0xb2   : > { %1114 = vmatpush.xpose.msra.mxu2 %v3704_v22  ;;  %v3089_v22 = vand.u32 4294901760, %v437_v39 }
  0xb4   : > { %1059 = vmatpush.xpose.msra.mxu1 %v2684_v31  ;;  %1017 = vmatpush.xpose.msra.mxu0 %v2723_v29  ;;  %v2980_v31 = vand.u32 4294901760, %v458_v6  ;;  %v452_v29 = vsel %vm315_vm1, %v288_v8, 0  ;;  %v3101_v34 = vsub.f32 %v437_v39, %v3089_v22  ;;  %v277_v39 = vld [vmem:[%s2403_s29 + $0x108] sm:$0xff] }
  0xb5   : > { %1171 = vmatpush.xpose.msra.mxu3 %v2709_v7 }
  0xb6   : > { %1118 = vmatpush.xpose.msra.mxu2 %v3705_v46  ;;  %v434_v46 = vsel %vm315_vm1, %v282_v42, 0  ;;  %v306_v42 = vld [vmem:[%s2403_s29 + $0x1f0] sm:$0xff] }
  0xb7   : > { %v3103_v49 = vand.u32 4294901760, %v434_v46 }
  0xb8   : > { %1061 = vmatpush.xpose.msra.mxu1 %v2691_v59  ;;  %1020 = vmatpush.xpose.msra.mxu0 %v2741_v62  ;;  %v455_v59 = vsel %vm315_vm1, %v289_v41, 0  ;;  %v280_v41 = vld [vmem:[%s2403_s29 + $0x120] sm:$0xff] }
  0xb9   : > { %1173 = vmatpush.xpose.msra.mxu3 %v2725_v26 }
  0xba   : > { %1122 = vmatpush.xpose.msra.mxu2 %v3706_v43  ;;  %v281_v43 = vld [vmem:[%s2403_s29 + $0x128] sm:$0xff] }
  0xbc   : > { %1063 = vmatpush.xpose.msra.mxu1 %v2709_v7  ;;  %1023 = vmatpush.xpose.msra.mxu0 %v2762_v30  ;;  %v2991_v7 = vsub.f32 %v458_v6, %v2980_v31  ;;  %v3011_v30 = vand.u32 4294901760, %v452_v29  ;;  %v431_v6 = vsel %vm315_vm1, %v281_v43, 0 }
  0xbd   : > { %1175 = vmatpush.xpose.msra.mxu3 %v2743_v60  ;;  %v3109_v8 = vand.u32 4294901760, %v431_v6 }
  0xbe   : > { %1126 = vmatpush.xpose.msra.mxu2 %v3707_v50  ;;  %v3679_v62 = vand.u32 4294901760, %v2991_v7 }
  0xc0   : > { %1065 = vmatpush.xpose.msra.mxu1 %v2725_v26  ;;  %1026 = vmatpush.xpose.msra.mxu0 %v2787_v63  ;;  %v287_v26 = vld [vmem:[%s2403_s29 + $0x158] sm:$0xff] }
  0xc1   : > { %1177 = vmatpush.xpose.msra.mxu3 %v2764_v20 }
  0xc2   : > { %1130 = vmatpush.xpose.msra.mxu2 %v3708_v52 }
  0xc4   : > { %1067 = vmatpush.xpose.msra.mxu1 %v2743_v60  ;;  %1029 = vmatpush.xpose.msra.mxu0 %v2801_v38  ;;  %v1243_v38 = vsub.f32 %v2991_v7, %v3679_v62 }
  0xc5   : > { %1179 = vmatpush.xpose.msra.mxu3 %v2780_v37 }
  0xc6   : > { %1134 = vmatpush.xpose.msra.mxu2 %v961_v15 }
  0xc8   : > { %1069 = vmatpush.xpose.msra.mxu1 %v2764_v20  ;;  %1032 = vmatpush.xpose.msra.mxu0 %v2821_v23  ;;  %v2994_v20 = vand.u32 4294901760, %v455_v59  ;;  %v3029_v23 = vsub.f32 %v452_v29, %v3011_v30 }
  0xc9   : > { %1181 = vmatpush.xpose.msra.mxu3 %v2807_v36 }
  0xca   : > { %1138 = vmatpush.xpose.msra.mxu2 %v967_v25  ;;  %v3009_v60 = vsub.f32 %v455_v59, %v2994_v20 }
  0xcc   : > { %1071 = vmatpush.xpose.msra.mxu1 %v2780_v37  ;;  %1035 = vmatpush.xpose.msra.mxu0 %v2836_v21  ;;  %v449_v37 = vsel %vm315_vm1, %v287_v26, 0  ;;  %v3678_v15 = vand.u32 4294901760, %v3009_v60  ;;  %v285_v21 = vld [vmem:[%s2403_s29 + $0x148] sm:$0xff]  ;;  %v3669_v26 = vand.u32 4294901760, %v3101_v34 }
  0xcd   : > { %1183 = vmatpush.xpose.msra.mxu3 %v2823_v44  ;;  %v3031_v25 = vand.u32 4294901760, %v449_v37  ;;  %v443_v14 = vsel %vm315_vm1, %v285_v21, 0 }
  0xce   : > { %1142 = vmatpush.xpose.msra.mxu2 %v973_v33  ;;  %v1244_v33 = vand.u32 4294901760, %v1243_v38  ;;  %v3056_v1 = vand.u32 4294901760, %v443_v14  ;;  %v1285_v21 = vsub.f32 %v3101_v34, %v3669_v26 }
  0xcf   : > { %v3046_v55 = vsub.f32 %v449_v37, %v3031_v25  ;;  %v428_v37 = vsel %vm315_vm1, %v280_v41, 0  ;;  %v276_v41 = vld [vmem:[%s2403_s29 + $0x100] sm:$0xff] }
  0xd0   : > { %1073 = vmatpush.xpose.msra.mxu1 %v2807_v36  ;;  %1038 = vmatpush.xpose.msra.mxu0 %v2850_v19  ;;  %v1237_v36 = vsub.f32 %v2978_v35, %v3681_v24  ;;  %v3069_v11 = vsub.f32 %v443_v14, %v3056_v1  ;;  %v3126_v38 = vand.u32 4294901760, %v428_v37  ;;  %v278_v14 = vld [vmem:[%s2403_s29 + $0x110] sm:$0xff] }
  0xd1   : > { %1185 = vmatpush.xpose.msra.mxu3 %v2838_v45  ;;  %v3675_v48 = vand.u32 4294901760, %v3046_v55 }
  0xd2   : > { %1146 = vmatpush.xpose.msra.mxu2 %v979_v18  ;;  %v1238_v63 = vand.u32 4294901760, %v1237_v36  ;;  %v1249_v18 = vsub.f32 %v3009_v60, %v3678_v15  ;;  %v3672_v28 = vand.u32 4294901760, %v3069_v11  ;;  %v3117_v36 = vsub.f32 %v434_v46, %v3103_v49 }
  0xd3   : > { %v1261_v3 = vsub.f32 %v3046_v55, %v3675_v48  ;;  %v301_v48 = vld [vmem:[%s2403_s29 + $0x1c8] sm:$0xff] }
  0xd4   : > { %1075 = vmatpush.xpose.msra.mxu1 %v2823_v44  ;;  %1041 = vmatpush.xpose.msra.mxu0 %v2863_v40  ;;  %v286_v44 = vld [vmem:[%s2403_s29 + $0x150] sm:$0xff]  ;;  %v3676_v40 = vand.u32 4294901760, %v3029_v23  ;;  %v1250_v10 = vand.u32 4294901760, %v1249_v18  ;;  %v1273_v52 = vsub.f32 %v3069_v11, %v3672_v28  ;;  %v491_v15 = vsel %vm315_vm1, %v301_v48, 0 }
  0xd5   : > { %1187 = vmatpush.xpose.msra.mxu3 %v2852_v0  ;;  %v1262_v12 = vand.u32 4294901760, %v1261_v3  ;;  %v422_v3 = vsel %vm315_vm1, %v278_v14, 0  ;;  %v416_v14 = vsel %vm315_vm1, %v276_v41, 0 }
  0xd6   : > { %1150 = vmatpush.xpose.msra.mxu2 %v985_v58  ;;  %v1255_v56 = vsub.f32 %v3029_v23, %v3676_v40  ;;  %v1274_v59 = vand.u32 4294901760, %v1273_v52  ;;  %v3162_v52 = vand.u32 4294901760, %v422_v3 }
  0xd7   : > { %1044 = vmatmul.f32.vlgmr.msra.gmra.mxu0 %v2768_v17 }
  0xd8   : > { %1194 = vmatpush.xpose.msrb.mxu0 %v2968_v4  ;;  %1077 = vmatpush.xpose.msra.mxu1 %v2838_v45  ;;  %v446_v45 = vsel %vm315_vm1, %v286_v44, 0  ;;  %v1256_v9 = vand.u32 4294901760, %v1255_v56  ;;  %v279_v44 = vld [vmem:[%s2403_s29 + $0x118] sm:$0xff]  ;;  %v1286_v56 = vand.u32 4294901760, %v1285_v21 }
  0xd9   : > { %1390 = vmatpush.xpose.msrb.mxu3 %v2968_v4  ;;  %1152 = vmatmul.f32.vlgmr.msra.gmra.mxu2 %v2752_v13  ;;  %v3038_v19 = vand.u32 4294901760, %v446_v45  ;;  %v425_v18 = vsel %vm315_vm1, %v279_v44, 0 }
  0xda   : > { %1337 = vmatpush.xpose.msrb.mxu2 %v2978_v35  ;;  %1189 = vmatmul.f32.vlgmr.msra.gmra.mxu3 %v2752_v13  ;;  %v3145_v53 = vand.u32 4294901760, %v425_v18 }
  0xdb   : > { %v3054_v58 = vsub.f32 %v446_v45, %v3038_v19 }
  0xdc   : > { %1196 = vmatpush.xpose.msrb.mxu0 %v2980_v31  ;;  %1079 = vmatpush.xpose.msra.mxu1 %v2852_v0  ;;  %v284_v0 = vld [vmem:[%s2403_s29 + $0x140] sm:$0xff] }
  0xdd   : > { %1392 = vmatpush.xpose.msrb.mxu3 %v2980_v31  ;;  %v440_v27 = vsel %vm315_vm1, %v284_v0, 0  ;;  %v3673_v16 = vand.u32 4294901760, %v3054_v58 }
  0xde   : > { %1340 = vmatpush.xpose.msrb.mxu2 %v2991_v7  ;;  %v3075_v2 = vand.u32 4294901760, %v440_v27 }
  0xdf   : > { %1083 = vmatmul.f32.vlgmr.msra.gmra.mxu1 %v2775_v51  ;;  %v1267_v57 = vsub.f32 %v3054_v58, %v3673_v16 }
  0xe0   : > { %1239 = vmatpush.xpose.msrb.mxu1 %v1238_v63  ;;  %1198 = vmatpush.xpose.msrb.mxu0 %v2994_v20  ;;  %v3087_v61 = vsub.f32 %v440_v27, %v3075_v2  ;;  %v3124_v63 = vsub.f32 %v431_v6, %v3109_v8  ;;  %v419_v6 = vsel %vm315_vm1, %v277_v39, 0 }
  0xe1   : > { %1394 = vmatpush.xpose.msrb.mxu3 %v2994_v20  ;;  %v1268_v50 = vand.u32 4294901760, %v1267_v57 }
  0xe2   : > { %1343 = vmatpush.xpose.msrb.mxu2 %v3009_v60  ;;  %v3670_v5 = vand.u32 4294901760, %v3087_v61  ;;  %v3667_v0 = vand.u32 4294901760, %v3124_v63 }
  0xe4   : > { %1245 = vmatpush.xpose.msrb.mxu1 %v1244_v33  ;;  %1200 = vmatpush.xpose.msrb.mxu0 %v3011_v30  ;;  %v1279_v29 = vsub.f32 %v3087_v61, %v3670_v5  ;;  %v3668_v33 = vand.u32 4294901760, %v3117_v36  ;;  %v1297_v57 = vsub.f32 %v3124_v63, %v3667_v0  ;;  %v303_v5 = vld [vmem:[%s2403_s29 + $0x1d8] sm:$0xff] }
  0xe5   : > { %1396 = vmatpush.xpose.msrb.mxu3 %v3011_v30  ;;  %v497_v28 = vsel %vm315_vm1, %v303_v5, 0 }
  0xe6   : > { %1346 = vmatpush.xpose.msrb.mxu2 %v3029_v23  ;;  %v1280_v45 = vand.u32 4294901760, %v1279_v29  ;;  %v1291_v27 = vsub.f32 %v3117_v36, %v3668_v33 }
  0xe8   : > { %1251 = vmatpush.xpose.msrb.mxu1 %v1250_v10  ;;  %1202 = vmatpush.xpose.msrb.mxu0 %v3031_v25  ;;  %v3139_v10 = vsub.f32 %v428_v37, %v3126_v38  ;;  %v1292_v43 = vand.u32 4294901760, %v1291_v27  ;;  %v1298_v37 = vand.u32 4294901760, %v1297_v57  ;;  %v305_v27 = vld [vmem:[%s2403_s29 + $0x1e8] sm:$0xff] }
  0xe9   : > { %1398 = vmatpush.xpose.msrb.mxu3 %v3031_v25 }
  0xea   : > { %1349 = vmatpush.xpose.msrb.mxu2 %v3046_v55 }
  0xec   : > { %1257 = vmatpush.xpose.msrb.mxu1 %v1256_v9  ;;  %1204 = vmatpush.xpose.msrb.mxu0 %v3038_v19  ;;  %v307_v9 = vld [vmem:[%s2403_s29 + $0x1f8] sm:$0xff] }
  0xed   : > { %1400 = vmatpush.xpose.msrb.mxu3 %v3038_v19  ;;  %v509_v46 = vsel %vm315_vm1, %v307_v9, 0 }
  0xee   : > { %1352 = vmatpush.xpose.msrb.mxu2 %v3054_v58  ;;  %v3169_v29 = vand.u32 4294901760, %v509_v46 }
  0xf0   : > { %1263 = vmatpush.xpose.msrb.mxu1 %v1262_v12  ;;  %1206 = vmatpush.xpose.msrb.mxu0 %v3056_v1  ;;  %v3665_v12 = vand.u32 4294901760, %v3139_v10  ;;  %v3188_v9 = vsub.f32 %v509_v46, %v3169_v29 }
  0xf1   : > { %1402 = vmatpush.xpose.msrb.mxu3 %v3056_v1 }
  0xf2   : > { %1355 = vmatpush.xpose.msrb.mxu2 %v3069_v11  ;;  %v1303_v44 = vsub.f32 %v3139_v10, %v3665_v12  ;;  %3710 = vst [vmem:[#allocation9_spill] sm:$0xff] %v3188_v9 }
  0xf4   : > { %1269 = vmatpush.xpose.msrb.mxu1 %v1268_v50  ;;  %1208 = vmatpush.xpose.msrb.mxu0 %v3075_v2  ;;  %v3160_v50 = vsub.f32 %v425_v18, %v3145_v53  ;;  %v3179_v18 = vsub.f32 %v422_v3, %v3162_v52  ;;  %v503_v3 = vsel %vm315_vm1, %v305_v27, 0  ;;  %v1304_v57 = vand.u32 4294901760, %v1303_v44 }
  0xf5   : > { %1404 = vmatpush.xpose.msrb.mxu3 %v3075_v2  ;;  %v3208_v27 = vand.u32 4294901760, %v503_v3 }
  0xf6   : > { %1358 = vmatpush.xpose.msrb.mxu2 %v3087_v61  ;;  %v3666_v21 = vand.u32 4294901760, %v3160_v50  ;;  %v3671_v41 = vand.u32 4294901760, %v3179_v18 }
  0xf8   : > { %1275 = vmatpush.xpose.msrb.mxu1 %v1274_v59  ;;  %1210 = vmatpush.xpose.msrb.mxu0 %v3089_v22  ;;  %v506_v59 = vsel %vm315_vm1, %v306_v42, 0  ;;  %v3193_v42 = vand.u32 4294901760, %v416_v14  ;;  %v1315_v33 = vsub.f32 %v3179_v18, %v3671_v41 }
  0xf9   : > { %1406 = vmatpush.xpose.msrb.mxu3 %v3089_v22 }
  0xfa   : > { %1361 = vmatpush.xpose.msrb.mxu2 %v3101_v34  ;;  %3711 = vst [vmem:[#allocation10_spill] sm:$0xff] %v3193_v42  ;;  %v1316_v16 = vand.u32 4294901760, %v1315_v33 }
  0xfc   : > { %1281 = vmatpush.xpose.msrb.mxu1 %v1280_v45  ;;  %1212 = vmatpush.xpose.msrb.mxu0 %v3103_v49  ;;  %v3174_v45 = vand.u32 4294901760, %v419_v6 }
  0xfd   : > { %1408 = vmatpush.xpose.msrb.mxu3 %v3103_v49 }
  0xfe   : > { %1364 = vmatpush.xpose.msrb.mxu2 %v3117_v36  ;;  %3709 = vst [vmem:[#allocation8_spill] sm:$0xff] %v3174_v45  ;;  %v3191_v39 = vsub.f32 %v419_v6, %v3174_v45  ;;  %v304_v6 = vld [vmem:[%s2403_s29 + $0x1e0] sm:$0xff] }
 0x100   : > { %1287 = vmatpush.xpose.msrb.mxu1 %v1286_v56  ;;  %1214 = vmatpush.xpose.msrb.mxu0 %v3109_v8  ;;  %v3182_v56 = vand.u32 4294901760, %v506_v59  ;;  %v3677_v12 = vand.u32 4294901760, %v3191_v39 }
 0x101   : > { %1410 = vmatpush.xpose.msrb.mxu3 %v3109_v8 }
 0x102   : > { %1367 = vmatpush.xpose.msrb.mxu2 %v3124_v63  ;;  %v3202_v46 = vsub.f32 %v506_v59, %v3182_v56  ;;  %v500_v59 = vsel %vm315_vm1, %v304_v6, 0  ;;  %v1321_v6 = vsub.f32 %v3191_v39, %v3677_v12 }
 0x104   : > { %1293 = vmatpush.xpose.msrb.mxu1 %v1292_v43  ;;  %1216 = vmatpush.xpose.msrb.mxu0 %v3126_v38  ;;  %v1309_v43 = vsub.f32 %v3160_v50, %v3666_v21  ;;  %3712 = vst [vmem:[#allocation11_spill] sm:$0xff] %v3202_v46  ;;  %v3210_v44 = vpop.xlane.xlu1 %1963  ;;  %v3214_v21 = vsub.f32 %v416_v14, %v3193_v42  ;;  %v3680_v26 = vand.u32 4294901760, %v3202_v46 }
 0x105   : > { %1412 = vmatpush.xpose.msrb.mxu3 %v3126_v38  ;;  %2269 = vrcp.f32 %v3210_v44  ;;  %vm1973_vm2 = vweird.f32 %v3210_v44 }
 0x106   : > { %1370 = vmatpush.xpose.msrb.mxu2 %v3139_v10  ;;  %v1310_v0 = vand.u32 4294901760, %v1309_v43  ;;  %v3232_v43 = vand.u32 4294901760, %v500_v59  ;;  %v3685_v41 = vand.u32 4294901760, %v3214_v21 }
 0x108   : > { %1299 = vmatpush.xpose.msrb.mxu1 %v1298_v37  ;;  %1218 = vmatpush.xpose.msrb.mxu0 %v3145_v53  ;;  %v3674_v37 = vand.u32 4294901760, %v3188_v9  ;;  %v3249_v5 = vsub.f32 %v500_v59, %v3232_v43  ;;  %v1327_v24 = vsub.f32 %v3214_v21, %v3685_v41 }
 0x109   : > { %1414 = vmatpush.xpose.msrb.mxu3 %v3145_v53 }
 0x10a   : > { %1373 = vmatpush.xpose.msrb.mxu2 %v3160_v50  ;;  %v1578_v14 = vsub.f32 %v3188_v9, %v3674_v37  ;;  %v1584_v37 = vsub.f32 %v3202_v46, %v3680_v26  ;;  %v1322_v26 = vand.u32 4294901760, %v1321_v6  ;;  %v3713_v6 = vand.u32 4294901760, %v2978_v35  ;;  %v300_v35 = vld [vmem:[%s2403_s29 + $0x1c0] sm:$0xff] }
 0x10b   : > { %v2270_v40 = vpop.eup %2269  ;;  %v1328_v9 = vand.u32 4294901760, %v1327_v24 }
 0x10c   : > { %1305 = vmatpush.xpose.msrb.mxu1 %v1304_v57  ;;  %1220 = vmatpush.xpose.msrb.mxu0 %v3162_v52  ;;  %v3230_v57 = vsub.f32 %v503_v3, %v3208_v27  ;;  %v302_v3 = vld [vmem:[%s2403_s29 + $0x1d0] sm:$0xff]  ;;  %v1579_v12 = vand.u32 4294901760, %v1578_v14  ;;  %v1969_v33 = vmul.f32 %v2270_v40, %v3210_v44  ;;  %v1979_v14 = vand.u32 2147483648, %v3210_v44 }
 0x10d   : > { %1416 = vmatpush.xpose.msrb.mxu3 %v3162_v52  ;;  %v3254_v62 = vpop.xlane.xlu1 %1966  ;;  %v494_v46 = vsel %vm315_vm1, %v302_v3, 0  ;;  %v1585_v59 = vand.u32 4294901760, %v1584_v37  ;;  %vm1974_vm3 = vweird.f32 %v2270_v40  ;;  %v1977_v3 = vand.u32 2147483647, %v3210_v44 }
 0x10e   : > { %1376 = vmatpush.xpose.msrb.mxu2 %v3179_v18  ;;  %2271 = vrcp.f32 %v3254_v62  ;;  %v3277_v41 = vand.u32 4294901760, %v494_v46  ;;  %vm3287_vm4 = vmor %vm1973_vm2, %vm1974_vm3  ;;  %vm1987_vm6 = vweird.f32 %v3254_v62  ;;  %vm2063_vm2 = vcmask 1043456  }
 0x10f   : > { %vm3294_vm5 = vcmp.eq.f32.partialorder %v1977_v3, 8.507059e+37 }
 0x110   : > { %1311 = vmatpush.xpose.msrb.mxu1 %v1310_v0  ;;  %1222 = vmatpush.xpose.msrb.mxu0 %v3174_v45  ;;  %v3251_v0 = vand.u32 4294901760, %v497_v28 }
 0x111   : > { %1418 = vmatpush.xpose.msrb.mxu3 %v3174_v45  ;;  %v1970_v45 = vsub.f32 1.0, %v1969_v33 }
 0x112   : > { %1379 = vmatpush.xpose.msrb.mxu2 %v3191_v39  ;;  %v3275_v33 = vsub.f32 %v497_v28, %v3251_v0  ;;  %v3717_v28 = vand.u32 4294901760, %v2991_v7 }
 0x114   : > { %1317 = vmatpush.xpose.msrb.mxu1 %v1316_v16  ;;  %1224 = vmatpush.xpose.msrb.mxu0 %v3193_v42  ;;  %v3714_v16 = vand.u32 4294901760, %v3230_v57  ;;  %v2272_v24 = vpop.eup %2271  ;;  %v3722_v48 = vand.u32 4294901760, %v3275_v33 }
 0x115   : > { %1420 = vmatpush.xpose.msrb.mxu3 %v3193_v42  ;;  %v3281_v42 = vand.u32 4294901760, %v491_v15  ;;  %v1983_v3 = vmul.f32 %v2272_v24, %v3254_v62  ;;  %vm1988_vm7 = vweird.f32 %v2272_v24 }
 0x116   : > { %1382 = vmatpush.xpose.msrb.mxu2 %v3214_v21  ;;  %v1590_v37 = vsub.f32 %v3230_v57, %v3714_v16  ;;  %v1991_v16 = vand.u32 2147483647, %v3254_v62  ;;  %vm3337_vm8 = vmor %vm1987_vm6, %vm1988_vm7 }
 0x117   : > { %1230 = vmatmul.f32.vlgmr.msrb.gmra.mxu0 %v2795_v54  ;;  %v1984_v7 = vsub.f32 1.0, %v1983_v3 }
 0x118   : > { %1431 = vmatpush.xpose.msra.mxu0 %v3713_v6  ;;  %v1971_v6 = vmul.f32 %v2270_v40, %v1970_v45  ;;  %1323 = vmatpush.xpose.msrb.mxu1 %v1322_v26  ;;  %v488_v26 = vsel %vm315_vm1, %v300_v35, 0  ;;  %v1591_v44 = vand.u32 4294901760, %v1590_v37  ;;  %vm1992_vm9 = vcmp.eq.f32.partialorder %v1991_v16, 8.507059e+37 }
 0x119   : > { %1580 = vmatpush.xpose.msra.mxu3 %v1579_v12  ;;  %v1980_v12 = vor.u32 1.1754944e-38, %v1979_v14  ;;  %1385 = vmatmul.f32.vlgmr.msrb.gmra.mxu2 %v2768_v17  ;;  %v3720_v14 = vand.u32 4294901760, %v3249_v5  ;;  %v1985_v3 = vmul.f32 %v2272_v24, %v1984_v7  ;;  %v3725_v7 = vand.u32 4294901760, %v3029_v23 }
 0x11a   : > { %1535 = vmatpush.xpose.msra.mxu2 %v3169_v29  ;;  %1424 = vmatmul.f32.vlgmr.msrb.gmra.mxu3 %v2775_v51  ;;  %v1972_v45 = vadd.f32 %v2270_v40, %v1971_v6  ;;  %v3305_v6 = vsub.f32 %v494_v46, %v3277_v41  ;;  %v3318_v46 = vand.u32 4294901760, %v488_v26 }
 0x11b   : > { %v1596_v51 = vsub.f32 %v3249_v5, %v3720_v14  ;;  %v299_v14 = vld [vmem:[%s2403_s29 + $0x1b8] sm:$0xff] }
 0x11c   : > { %1435 = vmatpush.xpose.msra.mxu0 %v3717_v28  ;;  %v1976_v35 = vsel %vm3287_vm4, %v2270_v40, %v1972_v45  ;;  %v3312_v28 = vsub.f32 %v491_v15, %v3281_v42  ;;  %1329 = vmatpush.xpose.msrb.mxu1 %v1328_v9  ;;  %v3721_v40 = vand.u32 4294901760, %v3009_v60  ;;  %v1607_v45 = vand.u32 4294901760, %v3305_v6  ;;  %v298_v60 = vld [vmem:[%s2403_s29 + $0x1b0] sm:$0xff] }
 0x11d   : > { %1586 = vmatpush.xpose.msra.mxu3 %v1585_v59  ;;  %v1993_v59 = vand.u32 2147483648, %v3254_v62  ;;  %v1981_v37 = vsel %vm3294_vm5, %v1980_v12, %v1976_v35  ;;  %v1597_v9 = vand.u32 4294901760, %v1596_v51  ;;  %v1602_v12 = vsub.f32 %v3275_v33, %v3722_v48 }
 0x11e   : > { %1537 = vmatpush.xpose.msra.mxu2 %v3182_v56  ;;  %v3324_v15 = vmul.f32 %v2883_v47, %v1981_v37  ;;  %v1613_v35 = vand.u32 4294901760, %v3312_v28  ;;  %v3348_v62 = vsub.f32 %v488_v26, %v3318_v46  ;;  %v482_v23 = vsel %vm315_vm1, %v298_v60, 0 }
 0x11f   : > { %v1994_v51 = vor.u32 1.1754944e-38, %v1993_v59  ;;  %1331 = vmatmul.f32.vlgmr.msrb.gmra.mxu1 %v2752_v13  ;;  %v1603_v37 = vand.u32 4294901760, %v1602_v12  ;;  %v1608_v59 = vsub.f32 %v3305_v6, %v1607_v45  ;;  %v3371_v47 = vand.u32 4294901760, %v482_v23 }
 0x120   : > { %1498 = vmatpush.xpose.msra.mxu1 %v2968_v4  ;;  %1439 = vmatpush.xpose.msra.mxu0 %v3721_v40  ;;  %v485_v4 = vsel %vm315_vm1, %v299_v14, 0  ;;  %v297_v40 = vld [vmem:[%s2403_s29 + $0x1a8] sm:$0xff]  ;;  %v1614_v48 = vsub.f32 %v3312_v28, %v1613_v35  ;;  %v1619_v12 = vand.u32 4294901760, %v3348_v62 }
 0x121   : > { %1592 = vmatpush.xpose.msra.mxu3 %v1591_v44  ;;  %2014 = vperm.xlu0 %2264, %v3324_v15   ;;  %v1986_v44 = vadd.f32 %v2272_v24, %v1985_v3  ;;  %v3353_v14 = vand.u32 4294901760, %v485_v4 }
 0x122   : > { %1539 = vmatpush.xpose.msra.mxu2 %v3208_v27  ;;  %v1620_v60 = vsub.f32 %v3348_v62, %v1619_v12 }
 0x123   : > { %v3369_v3 = vsub.f32 %v485_v4, %v3353_v14  ;;  %v3727_v4 = vand.u32 4294901760, %v3054_v58  ;;  %v3728_v58 = vand.u32 4294901760, %v3069_v11 }
 0x124   : > { %1500 = vmatpush.xpose.msra.mxu1 %v2980_v31  ;;  %1443 = vmatpush.xpose.msra.mxu0 %v3725_v7  ;;  %v1990_v31 = vsel %vm3337_vm8, %v2272_v24, %v1986_v44  ;;  %v1609_v24 = vand.u32 4294901760, %v1608_v59  ;;  %v3385_v7 = vsub.f32 %v482_v23, %v3371_v47 }
 0x125   : > { %1598 = vmatpush.xpose.msra.mxu3 %v1597_v9  ;;  %v1995_v16 = vsel %vm1992_vm9, %v1994_v51, %v1990_v31  ;;  %v3726_v9 = vand.u32 4294901760, %v3046_v55  ;;  %v296_v55 = vld [vmem:[%s2403_s29 + $0x1a0] sm:$0xff]  ;;  %v1615_v51 = vand.u32 4294901760, %v1614_v48  ;;  %v1625_v44 = vand.u32 4294901760, %v3369_v3 }
 0x126   : > { %1541 = vmatpush.xpose.msra.mxu2 %v3232_v43  ;;  %v1997_v26 = vmul.f32 %v2900_v32, %v1995_v16  ;;  %v479_v32 = vsel %vm315_vm1, %v297_v40, 0  ;;  %v476_v59 = vsel %vm315_vm1, %v296_v55, 0  ;;  %v1621_v16 = vand.u32 4294901760, %v1620_v60 }
 0x127   : > { %v3393_v31 = vand.u32 4294901760, %v476_v59  ;;  %v1626_v23 = vsub.f32 %v3369_v3, %v1625_v44  ;;  %v1631_v40 = vand.u32 4294901760, %v3385_v7  ;;  %v3729_v48 = vand.u32 4294901760, %v3087_v61 }
 0x128   : > { %1502 = vmatpush.xpose.msra.mxu1 %v2994_v20  ;;  %1447 = vmatpush.xpose.msra.mxu0 %v3726_v9  ;;  %v1998_v20 = vsub.f32 %v1997_v26, %v3324_v15  ;;  %v294_v9 = vld [vmem:[%s2403_s29 + $0x190] sm:$0xff]  ;;  %v3730_v60 = vand.u32 4294901760, %v3101_v34 }
 0x129   : > { %1604 = vmatpush.xpose.msra.mxu3 %v1603_v37  ;;  %v3387_v37 = vand.u32 4294901760, %v479_v32  ;;  %v3409_v11 = vsub.f32 %v476_v59, %v3393_v31 }
 0x12a   : > { %1543 = vmatpush.xpose.msra.mxu2 %v3251_v0  ;;  %2005 = vperm.xlu2 %2263, %v1998_v20   ;;  %v1632_v20 = vsub.f32 %v3385_v7, %v1631_v40 }
 0x12b   : > { %v3402_v26 = vsub.f32 %v479_v32, %v3387_v37  ;;  %v1643_v61 = vand.u32 4294901760, %v3409_v11 }
 0x12c   : > { %1504 = vmatpush.xpose.msra.mxu1 %v3011_v30  ;;  %1451 = vmatpush.xpose.msra.mxu0 %v3727_v4  ;;  %v295_v30 = vld [vmem:[%s2403_s29 + $0x198] sm:$0xff]  ;;  %v1633_v4 = vand.u32 4294901760, %v1632_v20 }
 0x12d   : > { %1610 = vmatpush.xpose.msra.mxu3 %v1609_v24  ;;  %v1627_v24 = vand.u32 4294901760, %v1626_v23  ;;  %v1637_v32 = vand.u32 4294901760, %v3402_v26  ;;  %v1644_v34 = vsub.f32 %v3409_v11, %v1643_v61  ;;  %v312_v23 = vpop.permute.xlu2 %311 }
 0x12e   : > { %1545 = vmatpush.xpose.msra.mxu2 %v3277_v41 }
 0x12f   : > { %v1638_v59 = vsub.f32 %v3402_v26, %v1637_v32 }
 0x130   : > { %1506 = vmatpush.xpose.msra.mxu1 %v3031_v25  ;;  %1455 = vmatpush.xpose.msra.mxu0 %v3728_v58  ;;  %v473_v25 = vsel %vm315_vm1, %v295_v30, 0 }
 0x131   : > { %1616 = vmatpush.xpose.msra.mxu3 %v1615_v51  ;;  %v3417_v55 = vand.u32 4294901760, %v473_v25  ;;  %v293_v51 = vld [vmem:[%s2403_s29 + $0x188] sm:$0xff] }
 0x132   : > { %1547 = vmatpush.xpose.msra.mxu2 %v3281_v42 }
 0x133   : > { %v3430_v30 = vsub.f32 %v473_v25, %v3417_v55  ;;  %v1639_v25 = vand.u32 4294901760, %v1638_v59 }
 0x134   : > { %1508 = vmatpush.xpose.msra.mxu1 %v3038_v19  ;;  %1459 = vmatpush.xpose.msra.mxu0 %v3729_v48  ;;  %v470_v19 = vsel %vm315_vm1, %v294_v9, 0  ;;  %v3731_v9 = vand.u32 4294901760, %v3117_v36  ;;  %v549_v36 = vpop.f32.mrf.mxu0 }
 0x135   : > { %1622 = vmatpush.xpose.msra.mxu3 %v1621_v16  ;;  %v3432_v58 = vand.u32 4294901760, %v470_v19  ;;  %v292_v16 = vld [vmem:[%s2403_s29 + $0x180] sm:$0xff]  ;;  %v1649_v48 = vand.u32 4294901760, %v3430_v30 }
 0x136   : > { %1549 = vmatpush.xpose.msra.mxu2 %v3318_v46 }
 0x138   : > { %1510 = vmatpush.xpose.msra.mxu1 %v3056_v1  ;;  %1463 = vmatpush.xpose.msra.mxu0 %v3730_v60  ;;  %v467_v1 = vsel %vm315_vm1, %v293_v51, 0  ;;  %v3451_v51 = vperm.slane %v312_v23, 0  ;;  %v1645_v60 = vand.u32 4294901760, %v1644_v34 }
 0x139   : > { %1628 = vmatpush.xpose.msra.mxu3 %v1627_v24  ;;  %v3445_v24 = vsub.f32 %v470_v19, %v3432_v58  ;;  %v3447_v20 = vand.u32 4294901760, %v467_v1  ;;  %v1650_v19 = vsub.f32 %v3430_v30, %v1649_v48 }
 0x13a   : > { %1551 = vmatpush.xpose.msra.mxu2 %v3353_v14 }
 0x13b   : > { %v1655_v59 = vand.u32 4294901760, %v3445_v24  ;;  %v1651_v34 = vand.u32 4294901760, %v1650_v19 }
 0x13c   : > { %1512 = vmatpush.xpose.msra.mxu1 %v3075_v2  ;;  %1467 = vmatpush.xpose.msra.mxu0 %v3731_v9  ;;  %v464_v2 = vsel %vm315_vm1, %v292_v16, 0  ;;  %v3461_v9 = vsub.f32 %v467_v1, %v3447_v20 }
 0x13d   : > { %1634 = vmatpush.xpose.msra.mxu3 %v1633_v4  ;;  %v3732_v4 = vand.u32 4294901760, %v3124_v63  ;;  %v3463_v16 = vand.u32 4294901760, %v464_v2  ;;  %v3733_v63 = vand.u32 4294901760, %v3139_v10  ;;  %v1656_v23 = vsub.f32 %v3445_v24, %v1655_v59 }
 0x13e   : > { %1553 = vmatpush.xpose.msra.mxu2 %v3371_v47  ;;  %v1661_v1 = vand.u32 4294901760, %v3461_v9  ;;  %v3734_v10 = vand.u32 4294901760, %v3160_v50 }
 0x140   : > { %1514 = vmatpush.xpose.msra.mxu1 %v3089_v22  ;;  %1471 = vmatpush.xpose.msra.mxu0 %v3732_v4  ;;  %v550_v22 = vadd.f32 %v549_v36, %v3451_v51  ;;  %v650_v4 = vpop.f32.mrf.mxu1  ;;  %v1662_v36 = vsub.f32 %v3461_v9, %v1661_v1 }
 0x141   : > { %1640 = vmatpush.xpose.msra.mxu3 %v1639_v25  ;;  %v3475_v25 = vsub.f32 %v464_v2, %v3463_v16 }
 0x142   : > { %1555 = vmatpush.xpose.msra.mxu2 %v3387_v37  ;;  %v1663_v50 = vand.u32 4294901760, %v1662_v36 }
 0x143   : > { %v1667_v19 = vand.u32 4294901760, %v3475_v25 }
 0x144   : > { %1516 = vmatpush.xpose.msra.mxu1 %v3103_v49  ;;  %1475 = vmatpush.xpose.msra.mxu0 %v3733_v63  ;;  %v651_v49 = vadd.f32 %v650_v4, %v550_v22  ;;  %v704_v63 = vpop.f32.mrf.mxu2  ;;  %v3736_v4 = vand.u32 4294901760, %v3191_v39 }
 0x145   : > { %1646 = vmatpush.xpose.msra.mxu3 %v1645_v60  ;;  %v1657_v60 = vand.u32 4294901760, %v1656_v23  ;;  %v1668_v22 = vsub.f32 %v3475_v25, %v1667_v19 }
 0x146   : > { %1557 = vmatpush.xpose.msra.mxu2 %v3393_v31  ;;  %v705_v2 = vadd.f32 %v704_v63, %v651_v49  ;;  %v812_v49 = vpop.f32.mrf.mxu0 }
 0x148   : > { %1518 = vmatpush.xpose.msra.mxu1 %v3109_v8  ;;  %1479 = vmatpush.xpose.msra.mxu0 %v3734_v10  ;;  %v3735_v8 = vand.u32 4294901760, %v3179_v18  ;;  %v849_v36 = vpop.f32.mrf.mxu1 }
 0x149   : > { %1652 = vmatpush.xpose.msra.mxu3 %v1651_v34  ;;  %v743_v34 = vpop.f32.mrf.mxu3 }
 0x14a   : > { %1559 = vmatpush.xpose.msra.mxu2 %v3417_v55  ;;  %v744_v23 = vadd.f32 %v743_v34, %v705_v2  ;;  %v3740_v2 = vld [vmem:[#allocation8_spill] sm:$0xff]  ;;  %v3743_v34 = vld [vmem:[#allocation10_spill] sm:$0xff] }
 0x14c   : > { %1520 = vmatpush.xpose.msra.mxu1 %v3126_v38  ;;  %1483 = vmatpush.xpose.msra.mxu0 %v3735_v8  ;;  %v1669_v38 = vand.u32 4294901760, %v1668_v22  ;;  %v890_v18 = vpop.f32.mrf.mxu2  ;;  %v813_v10 = vadd.f32 %v812_v49, %v744_v23  ;;  %v3741_v8 = vld [vmem:[#allocation11_spill] sm:$0xff] }
 0x14d   : > { %1658 = vmatpush.xpose.msra.mxu3 %v1657_v60  ;;  %v3737_v60 = vand.u32 4294901760, %v3214_v21  ;;  %v891_v63 = vadd.f32 %v890_v18, %v3451_v51 }
 0x14e   : > { %1561 = vmatpush.xpose.msra.mxu2 %v3432_v58  ;;  %v850_v21 = vadd.f32 %v849_v36, %v813_v10 }
 0x150   : > { %1522 = vmatpush.xpose.msra.mxu1 %v3145_v53  ;;  %1487 = vmatpush.xpose.msra.mxu0 %v3736_v4  ;;  %v3738_v53 = vld [vmem:[#allocation9_spill] sm:$0xff]  ;;  %v1875_v4 = vsub.f32 0.0, %v850_v21 }
 0x151   : > { %1664 = vmatpush.xpose.msra.mxu3 %v1663_v50  ;;  %v3739_v39 = vand.u32 4294901760, %v3738_v53  ;;  %v3742_v50 = vand.u32 4294901760, %v3741_v8 }
 0x152   : > { %1563 = vmatpush.xpose.msra.mxu2 %v3447_v20  ;;  %v1879_v49 = vmul.f32 1.442695, %v1875_v4 }
 0x154   : > { %1524 = vmatpush.xpose.msra.mxu1 %v3162_v52  ;;  %1491 = vmatpush.xpose.msra.mxu0 %v3737_v60  ;;  %v991_v52 = vpop.f32.mrf.mxu3  ;;  %v1045_v23 = vpop.f32.mrf.mxu0  ;;  %2273 = vpow2.f32 %v1879_v49 }
 0x155   : > { %1670 = vmatpush.xpose.msra.mxu3 %v1669_v38  ;;  %v992_v22 = vadd.f32 %v991_v52, %v891_v63  ;;  %v3744_v38 = vand.u32 4294901760, %v3230_v57 }
 0x156   : > { %1565 = vmatpush.xpose.msra.mxu2 %v3463_v16 }
 0x157   : > { %1493 = vmatmul.f32.vlgmr.msra.gmra.mxu0 %v2752_v13 }
 0x158   : > { %1678 = vmatpush.xpose.msrb.mxu0 %v3738_v53  ;;  %1526 = vmatpush.xpose.msra.mxu1 %v3740_v2 }
 0x159   : > { %1839 = vmatpush.xpose.msrb.mxu3 %v3169_v29  ;;  %1571 = vmatmul.f32.vlgmr.msra.gmra.mxu2 %v2795_v54  ;;  %v1046_v54 = vadd.f32 %v1045_v23, %v992_v22 }
 0x15a   : > { %1772 = vmatpush.xpose.msrb.mxu2 %v3739_v39  ;;  %1672 = vmatmul.f32.vlgmr.msra.gmra.mxu3 %v2752_v13 }
 0x15c   : > { %1681 = vmatpush.xpose.msrb.mxu0 %v3741_v8  ;;  %1528 = vmatpush.xpose.msra.mxu1 %v3743_v34  ;;  %v1084_v18 = vpop.f32.mrf.mxu1  ;;  %v1153_v10 = vpop.f32.mrf.mxu2  ;;  %v3747_v34 = vld [vmem:[#allocation7_spill] sm:$0xff] }
 0x15d   : > { %1841 = vmatpush.xpose.msrb.mxu3 %v3182_v56  ;;  %v1085_v60 = vadd.f32 %v1084_v18, %v1046_v54  ;;  %v1190_v36 = vpop.f32.mrf.mxu3 }
 0x15e   : > { %1776 = vmatpush.xpose.msrb.mxu2 %v3742_v50 }
 0x15f   : > { %1530 = vmatmul.f32.vlgmr.msra.gmra.mxu1 %v2752_v13  ;;  %v1154_v53 = vadd.f32 %v1153_v10, %v1085_v60 }
 0x160   : > { %1731 = vmatpush.xpose.msrb.mxu1 %v3169_v29  ;;  %1684 = vmatpush.xpose.msrb.mxu0 %v3230_v57  ;;  %v3745_v29 = vand.u32 4294901760, %v3249_v5 }
 0x161   : > { %1843 = vmatpush.xpose.msrb.mxu3 %v3208_v27  ;;  %v1191_v57 = vadd.f32 %v1190_v36, %v1154_v53 }
 0x162   : > { %1780 = vmatpush.xpose.msrb.mxu2 %v3744_v38 }
 0x163   : > { %v1876_v39 = vsub.f32 0.0, %v1191_v57 }
 0x164   : > { %1733 = vmatpush.xpose.msrb.mxu1 %v3182_v56  ;;  %1687 = vmatpush.xpose.msrb.mxu0 %v3249_v5  ;;  %v3746_v56 = vand.u32 4294901760, %v3275_v33  ;;  %v2274_v5 = vpop.eup %2273 }
 0x165   : > { %1845 = vmatpush.xpose.msrb.mxu3 %v3232_v43  ;;  %v1881_v63 = vmul.f32 1.442695, %v1876_v39 }
 0x166   : > { %1784 = vmatpush.xpose.msrb.mxu2 %v3745_v29 }
 0x167   : > { %2275 = vpow2.f32 %v1881_v63 }
 0x168   : > { %1735 = vmatpush.xpose.msrb.mxu1 %v3208_v27  ;;  %1690 = vmatpush.xpose.msrb.mxu0 %v3275_v33  ;;  %v3537_v27 = vadd.f32 1.0, %v2274_v5 }
 0x169   : > { %1847 = vmatpush.xpose.msrb.mxu3 %v3251_v0 }
 0x16a   : > { %1788 = vmatpush.xpose.msrb.mxu2 %v3746_v56  ;;  %2277 = vrcp.f32 %v3537_v27  ;;  %vm1896_vm12 = vweird.f32 %v3537_v27 }
 0x16c   : > { %1737 = vmatpush.xpose.msrb.mxu1 %v3232_v43  ;;  %1693 = vmatpush.xpose.msrb.mxu0 %v3305_v6 }
 0x16d   : > { %1849 = vmatpush.xpose.msrb.mxu3 %v3277_v41  ;;  %v2276_v43 = vpop.eup %2275 }
 0x16e   : > { %1792 = vmatpush.xpose.msrb.mxu2 %v1607_v45 }
 0x170   : > { %1739 = vmatpush.xpose.msrb.mxu1 %v3251_v0  ;;  %1696 = vmatpush.xpose.msrb.mxu0 %v3312_v28  ;;  %v1888_v0 = vadd.f32 1.0, %v2276_v43 }
 0x171   : > { %1851 = vmatpush.xpose.msrb.mxu3 %v3281_v42 }
 0x172   : > { %1796 = vmatpush.xpose.msrb.mxu2 %v1613_v35  ;;  %2279 = vrcp.f32 %v1888_v0  ;;  %vm1910_vm10 = vweird.f32 %v1888_v0 }
 0x174   : > { %1741 = vmatpush.xpose.msrb.mxu1 %v3277_v41  ;;  %1699 = vmatpush.xpose.msrb.mxu0 %v3348_v62  ;;  %v2278_v41 = vpop.eup %2277 }
 0x175   : > { %1853 = vmatpush.xpose.msrb.mxu3 %v3318_v46  ;;  %v1892_v33 = vmul.f32 %v2278_v41, %v3537_v27  ;;  %vm1897_vm13 = vweird.f32 %v2278_v41 }
 0x176   : > { %1800 = vmatpush.xpose.msrb.mxu2 %v1619_v12  ;;  %vm1898_vm15 = vmor %vm1896_vm12, %vm1897_vm13 }
 0x177   : > { %v1893_v28 = vsub.f32 1.0, %v1892_v33 }
 0x178   : > { %1743 = vmatpush.xpose.msrb.mxu1 %v3281_v42  ;;  %1702 = vmatpush.xpose.msrb.mxu0 %v3369_v3  ;;  %v2280_v42 = vpop.eup %2279  ;;  %v1914_v3 = vand.u32 2147483647, %v1888_v0 }
 0x179   : > { %1855 = vmatpush.xpose.msrb.mxu3 %v3353_v14  ;;  %v1906_v6 = vmul.f32 %v2280_v42, %v1888_v0  ;;  %v1894_v35 = vmul.f32 %v2278_v41, %v1893_v28  ;;  %vm1911_vm11 = vweird.f32 %v2280_v42 }
 0x17a   : > { %1804 = vmatpush.xpose.msrb.mxu2 %v1625_v44  ;;  %vm1912_vm14 = vmor %vm1910_vm10, %vm1911_vm11  ;;  %v1900_v44 = vand.u32 2147483647, %v3537_v27  ;;  %vm1915_vm0 = vcmp.eq.f32.partialorder %v1914_v3, 8.507059e+37 }
 0x17b   : > { %v1895_v12 = vadd.f32 %v2278_v41, %v1894_v35 }
 0x17c   : > { %1745 = vmatpush.xpose.msrb.mxu1 %v3318_v46  ;;  %1705 = vmatpush.xpose.msrb.mxu0 %v3385_v7  ;;  %v1907_v46 = vsub.f32 1.0, %v1906_v6  ;;  %vm1901_vm1 = vcmp.eq.f32.partialorder %v1900_v44, 8.507059e+37 }
 0x17d   : > { %1857 = vmatpush.xpose.msrb.mxu3 %v3371_v47 }
 0x17e   : > { %1808 = vmatpush.xpose.msrb.mxu2 %v1631_v40  ;;  %v1908_v45 = vmul.f32 %v2280_v42, %v1907_v46  ;;  %v1899_v40 = vsel %vm1898_vm15, %v2278_v41, %v1895_v12 }
 0x180   : > { %1747 = vmatpush.xpose.msrb.mxu1 %v3353_v14  ;;  %1708 = vmatpush.xpose.msrb.mxu0 %v3402_v26  ;;  %v1909_v62 = vadd.f32 %v2280_v42, %v1908_v45  ;;  %v1916_v14 = vand.u32 2147483648, %v1888_v0 }
 0x181   : > { %1859 = vmatpush.xpose.msrb.mxu3 %v3387_v37 }
 0x182   : > { %1812 = vmatpush.xpose.msrb.mxu2 %v1637_v32  ;;  %v1913_v7 = vsel %vm1912_vm14, %v2280_v42, %v1909_v62 }
 0x184   : > { %1749 = vmatpush.xpose.msrb.mxu1 %v3371_v47  ;;  %1711 = vmatpush.xpose.msrb.mxu0 %v3409_v11  ;;  %v1902_v47 = vand.u32 2147483648, %v3537_v27 }
 0x185   : > { %1861 = vmatpush.xpose.msrb.mxu3 %v3393_v31 }
 0x186   : > { %1816 = vmatpush.xpose.msrb.mxu2 %v1643_v61  ;;  %v1903_v26 = vor.u32 1.1754944e-38, %v1902_v47  ;;  %v3588_v61 = vpop.permute.xlu2 %2005 }
 0x188   : > { %1751 = vmatpush.xpose.msrb.mxu1 %v3387_v37  ;;  %1714 = vmatpush.xpose.msrb.mxu0 %v3430_v30  ;;  %v1917_v37 = vor.u32 1.1754944e-38, %v1916_v14  ;;  %v1904_v32 = vsel %vm1901_vm1, %v1903_v26, %v1899_v40 }
 0x189   : > { %1863 = vmatpush.xpose.msrb.mxu3 %v3417_v55  ;;  %v1999_v30 = vperm.slane %v1904_v32, 0 }
 0x18a   : > { %1820 = vmatpush.xpose.msrb.mxu2 %v1649_v48  ;;  %v1918_v11 = vsel %vm1915_vm0, %v1917_v37, %v1913_v7 }
 0x18c   : > { %1753 = vmatpush.xpose.msrb.mxu1 %v3393_v31  ;;  %1717 = vmatpush.xpose.msrb.mxu0 %v3445_v24  ;;  %v2000_v31 = vperm.slane %v1918_v11, 0 }
 0x18d   : > { %1865 = vmatpush.xpose.msrb.mxu3 %v3432_v58 }
 0x18e   : > { %1824 = vmatpush.xpose.msrb.mxu2 %v1655_v59  ;;  %v2009_v48 = vmul.f32 %v3588_v61, %v2000_v31 }
 0x190   : > { %1755 = vmatpush.xpose.msrb.mxu1 %v3417_v55  ;;  %1720 = vmatpush.xpose.msrb.mxu0 %v3461_v9  ;;  %v2008_v55 = vmul.f32 %v3588_v61, %v1999_v30  ;;  %v2025_v9 = vld [vmem:[%s3595_s11] sm:$0xff] }
 0x191   : > { %1867 = vmatpush.xpose.msrb.mxu3 %v3447_v20  ;;  %vm2055_vm3 = vcmp.eq.s32.totalorder %v2025_v9, 1  ;;  %vm2080_vm4 = vcmp.ne.s32.totalorder %v2025_v9, 4294967295 }
 0x192   : > { %1828 = vmatpush.xpose.msrb.mxu2 %v1661_v1 }
 0x193   : > { %v3602_v24 = vpop.permute.xlu0 %2014 }
 0x194   : > { %1757 = vmatpush.xpose.msrb.mxu1 %v3432_v58  ;;  %1723 = vmatpush.xpose.msrb.mxu0 %v3475_v25  ;;  %v2017_v58 = vadd.f32 %v3602_v24, %v2008_v55  ;;  %v2018_v59 = vadd.f32 %v3602_v24, %v2009_v48  ;;  %v1231_v63 = vpop.f32.mrf.mxu0 }
 0x195   : > { %1869 = vmatpush.xpose.msrb.mxu3 %v3463_v16  ;;  %v1232_v27 = vadd.f32 %v1231_v63, %v3451_v51  ;;  %v2026_v63 = vld [vmem:[%s3595_s11 + $0x8] sm:$0xff] }
 0x196   : > { %1832 = vmatpush.xpose.msrb.mxu2 %v1667_v19  ;;  %v2021_v1 = vsub.f32 1.0, %v2017_v58  ;;  %v2022_v2 = vsub.f32 1.0, %v2018_v59  ;;  %v2027_v52 = vmul.f32 1.442695, %v2017_v58  ;;  %v2029_v25 = vmul.f32 1.442695, %v2018_v59 }
 0x197   : > { %1726 = vmatmul.f32.vlgmr.msrb.gmra.mxu0 %v2768_v17  ;;  %v2072_v19 = vrot.slane %v2018_v59, 4  ;;  %vm2056_vm13 = vcmp.eq.s32.totalorder %v2026_v63, 1  ;;  %vm2081_vm14 = vcmp.ne.s32.totalorder %v2026_v63, 4294967295 }
 0x198   : > { %1759 = vmatpush.xpose.msrb.mxu1 %v3447_v20  ;;  %1871 = vmatmul.f32.vlgmr.msrb.gmra.mxu3 %v2752_v13  ;;  %2281 = vpow2.f32 %v2027_v52  ;;  %v2035_v21 = vmul.f32 1.442695, %v2021_v1  ;;  %v2037_v8 = vmul.f32 1.442695, %v2022_v2  ;;  %v2061_v50 = vrot.slane %v2022_v2, 4 }
 0x199   : > { %1834 = vmatmul.f32.vlgmr.msrb.gmra.mxu2 %v2752_v13  ;;  %2283 = vpow2.f32 %v2029_v25  ;;  %v2074_v20 = vsel %vm2063_vm2, %v2017_v58, %v2072_v19 }
 0x19a   : > { %2285 = vpow2.f32 %v2035_v21  ;;  %v2064_v17 = vsel %vm2063_vm2, %v2021_v1, %v2061_v50 }
 0x19b   : > { %2287 = vpow2.f32 %v2037_v8  ;;  %v2078_v22 = vsel %vm2055_vm3, %v2064_v17, %v2074_v20 }
 0x19c   : > { %1761 = vmatpush.xpose.msrb.mxu1 %v3463_v16  ;;  %2084 = vst [vmem:[#allocation1] ss:$2 sm:$0xff] %v2078_v22  ;;  %v1332_v43 = vpop.f32.mrf.mxu1  ;;  %v1386_v41 = vpop.f32.mrf.mxu2 }
 0x19d   : > { %v1333_v0 = vadd.f32 %v1332_v43, %v1232_v27  ;;  %v1425_v42 = vpop.f32.mrf.mxu3 }
 0x19e   : > { %v2282_v13 = vpop.eup %2281 }
 0x19f   : > { %1765 = vmatmul.f32.vlgmr.msrb.gmra.mxu1 %v3747_v34  ;;  %v2284_v23 = vpop.eup %2283  ;;  %v1387_v33 = vadd.f32 %v1386_v41, %v1333_v0 }
 0x1a0   : > { %v2286_v4 = vpop.eup %2285 }
 0x1a1   : > { %v2288_v54 = vpop.eup %2287  ;;  %v2043_v38 = vadd.f32 %v2286_v4, %v2282_v13  ;;  %v1426_v6 = vadd.f32 %v1425_v42, %v1387_v33 }
 0x1a2   : > { %v2044_v49 = vadd.f32 %v2288_v54, %v2284_v23 }
 0x1a3   : > { %2289 = vlog2.f32 %v2043_v38  ;;  %v2088_v29 = vld.sshfl [vmem:[#allocation1 + $0x8] sm:$0xff pattern:$0x75316420]  ;;  %v2087_v53 = vld.sshfl [vmem:[#allocation1] sm:$0xff pattern:$0x75316420] }
 0x1a4   : > { %2291 = vlog2.f32 %v2044_v49 }
 0x1a9   : > { %v2290_v16 = vpop.eup %2289 }
 0x1aa   : > { %v2292_v18 = vpop.eup %2291  ;;  %v2048_v10 = vmul.f32 0.6931472, %v2290_v16 }
 0x1ab   : > { %v2050_v60 = vmul.f32 0.6931472, %v2292_v18 }
 0x1ac   : > { %v2095_v57 = vsub.f32 %v2048_v10, %v2087_v53 }
 0x1ad   : > { %v2096_v36 = vsub.f32 %v2050_v60, %v2088_v29 }
 0x1af   : > { %v2103_v56 = vrot.slane %v2096_v36, 4 }
 0x1b1   : > { %v2105_v39 = vsel %vm2063_vm2, %v2095_v57, %v2103_v56 }
 0x1b2   : > { %v2109_v5 = vsel %vm2080_vm4, %v2105_v39, 0.0 }
 0x1b3   : > { %2114 = vst [vmem:[#allocation1] ss:$2 sm:$0xff] %v2109_v5 }
 0x1d4   : > { %v1494_v28 = vpop.f32.mrf.mxu0 }
 0x1d5   : > { %v1495_v46 = vadd.f32 %v1494_v28, %v1426_v6 }
 0x1dc   : > { %v1531_v45 = vpop.f32.mrf.mxu1  ;;  %v1572_v47 = vpop.f32.mrf.mxu2 }
 0x1dd   : > { %v1532_v35 = vadd.f32 %v1531_v45, %v1495_v46  ;;  %v1573_v44 = vadd.f32 %v1572_v47, %v3451_v51  ;;  %v1673_v7 = vpop.f32.mrf.mxu3 }
 0x1df   : > { %v1877_v62 = vsub.f32 0.0, %v1532_v35  ;;  %v1674_v37 = vadd.f32 %v1673_v7, %v1573_v44 }
 0x1e1   : > { %v1883_v14 = vmul.f32 1.442695, %v1877_v62 }
 0x1e3   : > { %2293 = vpow2.f32 %v1883_v14 }
 0x1e9   : > { %v2294_v12 = vpop.eup %2293 }
 0x1ea   : > { %v1889_v3 = vadd.f32 1.0, %v2294_v12 }
 0x1ec   : > { %2295 = vrcp.f32 %v1889_v3  ;;  %vm1924_vm5 = vweird.f32 %v1889_v3  ;;  %v1930_v51 = vand.u32 2147483648, %v1889_v3  ;;  %v1928_v19 = vand.u32 2147483647, %v1889_v3 }
 0x1ee   : > { %v1931_v50 = vor.u32 1.1754944e-38, %v1930_v51  ;;  %vm1929_vm8 = vcmp.eq.f32.partialorder %v1928_v19, 8.507059e+37 }
 0x1f2   : > { %v2296_v26 = vpop.eup %2295 }
 0x1f3   : > { %v1920_v32 = vmul.f32 %v2296_v26, %v1889_v3  ;;  %vm1925_vm6 = vweird.f32 %v2296_v26 }
 0x1f4   : > { %vm1926_vm7 = vmor %vm1924_vm5, %vm1925_vm6 }
 0x1f5   : > { %v1921_v59 = vsub.f32 1.0, %v1920_v32 }
 0x1f7   : > { %v1922_v2 = vmul.f32 %v2296_v26, %v1921_v59 }
 0x1f9   : > { %v1923_v25 = vadd.f32 %v2296_v26, %v1922_v2 }
 0x1fb   : > { %v1927_v21 = vsel %vm1926_vm7, %v2296_v26, %v1923_v25 }
 0x1fc   : > { %v1932_v20 = vsel %vm1929_vm8, %v1931_v50, %v1927_v21 }
 0x1fd   : > { %v2001_v22 = vperm.slane %v1932_v20, 0 }
 0x1ff   : > { %v2010_v13 = vmul.f32 %v3588_v61, %v2001_v22 }
 0x201   : > { %v2019_v54 = vadd.f32 %v3602_v24, %v2010_v13 }
 0x203   : > { %v2023_v10 = vsub.f32 1.0, %v2019_v54  ;;  %v2031_v39 = vmul.f32 1.442695, %v2019_v54 }
 0x205   : > { %v2039_v57 = vmul.f32 1.442695, %v2023_v10 }
 0x214   : > { %v1727_v40 = vpop.f32.mrf.mxu0 }
 0x215   : > { %v1728_v11 = vadd.f32 %v1727_v40, %v1674_v37 }
 0x21b   : > { %v1872_v48 = vpop.f32.mrf.mxu3 }
 0x21c   : > { %v1766_v31 = vpop.f32.mrf.mxu1  ;;  %v1835_v30 = vpop.f32.mrf.mxu2 }
 0x21d   : > { %v1767_v55 = vadd.f32 %v1766_v31, %v1728_v11  ;;  %v2117_v31 = vld.sshfl [vmem:[#allocation1] sm:$0xff pattern:$0x75316420] }
 0x21f   : > { %v1836_v58 = vadd.f32 %v1835_v30, %v1767_v55  ;;  %v2118_v30 = vld.sshfl [vmem:[#allocation1 + $0x8] sm:$0xff pattern:$0x75316420]  ;;  %v2125_v55 = vsel %vm2063_vm2, %v2117_v31, 0.0 }
 0x221   : > { %v1873_v9 = vadd.f32 %v1872_v48, %v1836_v58  ;;  %v2126_v48 = vsel %vm2063_vm2, %v2118_v30, 0.0 }
 0x223   : > { %v1878_v1 = vsub.f32 0.0, %v1873_v9  ;;  %v2127_v9 = vadd.f32 %v2126_v48, %v2125_v55 }
 0x225   : > { %v1885_v52 = vmul.f32 1.442695, %v1878_v1 }
 0x227   : > { %2297 = vpow2.f32 %v1885_v52 }
 0x22d   : > { %v2298_v8 = vpop.eup %2297 }
 0x22e   : > { %v1890_v17 = vadd.f32 1.0, %v2298_v8 }
 0x230   : > { %2299 = vrcp.f32 %v1890_v17  ;;  %v1944_v38 = vand.u32 2147483648, %v1890_v17  ;;  %v1942_v16 = vand.u32 2147483647, %v1890_v17  ;;  %vm1938_vm10 = vweird.f32 %v1890_v17 }
 0x231   : > { %2301 = vpow2.f32 %v2039_v57 }
 0x232   : > { %v1945_v60 = vor.u32 1.1754944e-38, %v1944_v38  ;;  %vm1943_vm12 = vcmp.eq.f32.partialorder %v1942_v16, 8.507059e+37  ;;  %2303 = vpow2.f32 %v2031_v39 }
 0x236   : > { %v2300_v34 = vpop.eup %2299 }
 0x237   : > { %v1934_v23 = vmul.f32 %v2300_v34, %v1890_v17  ;;  %vm1939_vm9 = vweird.f32 %v2300_v34  ;;  %v2302_v28 = vpop.eup %2301 }
 0x238   : > { %vm1940_vm11 = vmor %vm1938_vm10, %vm1939_vm9  ;;  %v2304_v46 = vpop.eup %2303 }
 0x239   : > { %v1935_v4 = vsub.f32 1.0, %v1934_v23 }
 0x23b   : > { %v1936_v49 = vmul.f32 %v2300_v34, %v1935_v4 }
 0x23d   : > { %v1937_v18 = vadd.f32 %v2300_v34, %v1936_v49 }
 0x23f   : > { %v1941_v29 = vsel %vm1940_vm11, %v2300_v34, %v1937_v18 }
 0x240   : > { %v1946_v36 = vsel %vm1943_vm12, %v1945_v60, %v1941_v29 }
 0x241   : > { %v2002_v53 = vperm.slane %v1946_v36, 0 }
 0x243   : > { %v2011_v56 = vmul.f32 %v3588_v61, %v2002_v53 }
 0x245   : > { %v2020_v5 = vadd.f32 %v3602_v24, %v2011_v56  ;;  %v2045_v24 = vadd.f32 %v2304_v46, %v2302_v28 }
 0x247   : > { %v2024_v27 = vsub.f32 1.0, %v2020_v5  ;;  %v2033_v43 = vmul.f32 1.442695, %v2020_v5  ;;  %v2073_v0 = vrot.slane %v2020_v5, 4 }
 0x249   : > { %v2041_v41 = vmul.f32 1.442695, %v2024_v27  ;;  %v2062_v33 = vrot.slane %v2024_v27, 4  ;;  %2305 = vpow2.f32 %v2033_v43  ;;  %v2075_v6 = vsel %vm2063_vm2, %v2019_v54, %v2073_v0 }
 0x24b   : > { %2307 = vpow2.f32 %v2041_v41  ;;  %v2065_v42 = vsel %vm2063_vm2, %v2023_v10, %v2062_v33 }
 0x24c   : > { %v2079_v61 = vsel %vm2056_vm13, %v2065_v42, %v2075_v6  ;;  %2309 = vlog2.f32 %v2045_v24 }
 0x24d   : > { %2086 = vst [vmem:[#allocation1 + $0x10] ss:$2 sm:$0xff] %v2079_v61 }
 0x24f   : > { %v2306_v45 = vpop.eup %2305 }
 0x251   : > { %v2308_v35 = vpop.eup %2307 }
 0x252   : > { %v2046_v62 = vadd.f32 %v2308_v35, %v2306_v45  ;;  %v2310_v14 = vpop.eup %2309 }
 0x253   : > { %v2052_v7 = vmul.f32 0.6931472, %v2310_v14 }
 0x254   : > { %2311 = vlog2.f32 %v2046_v62  ;;  %v2090_v47 = vld.sshfl [vmem:[#allocation1 + $0x18] sm:$0xff pattern:$0x75316420]  ;;  %v2089_v44 = vld.sshfl [vmem:[#allocation1 + $0x10] sm:$0xff pattern:$0x75316420] }
 0x255   : > { %v2097_v26 = vsub.f32 %v2052_v7, %v2089_v44 }
 0x25a   : > { %v2312_v12 = vpop.eup %2311 }
 0x25b   : > { %v2054_v3 = vmul.f32 0.6931472, %v2312_v12 }
 0x25d   : > { %v2098_v37 = vsub.f32 %v2054_v3, %v2090_v47 }
 0x25f   : > { %v2104_v40 = vrot.slane %v2098_v37, 4 }
 0x261   : > { %v2106_v11 = vsel %vm2063_vm2, %v2097_v26, %v2104_v40 }
 0x262   : > { %v2110_v32 = vsel %vm2081_vm14, %v2106_v11, 0.0 }
 0x263   : > { %2116 = vst [vmem:[#allocation1 + $0x10] ss:$2 sm:$0xff] %v2110_v32 }
 0x26a   : > { %v2119_v58 = vld.sshfl [vmem:[#allocation1 + $0x10] sm:$0xff pattern:$0x75316420]  ;;  %v2120_v59 = vld.sshfl [vmem:[#allocation1 + $0x18] sm:$0xff pattern:$0x75316420] }
 0x26b   : > { %v2128_v1 = vsel %vm2063_vm2, %v2119_v58, 0.0  ;;  %v2130_v52 = vsel %vm2063_vm2, %v2120_v59, 0.0 }
 0x26c   : > { %v2129_v2 = vadd.f32 %v2128_v1, %v2127_v9 }
 0x26e   : > { %v2131_v25 = vadd.f32 %v2130_v52, %v2129_v2 }
 0x270   : > { %2132 = vadd.xlane.f32.xlu1 %v2131_v25 }
 0x2e3   : > { %v2133_v51 = vpop.xlane.xlu1 %2132 }
 0x2e4   : > { %v2134_v19 = vrot.slane %v2133_v51, 4 }
 0x2e6   : > { %v2135_v21 = vadd.f32 %v2134_v19, %v2133_v51 }
 0x2e8   : > { %v2136_v8 = vrot.slane %v2135_v21, 2 }
 0x2ea   : > { %v2137_v50 = vadd.f32 %v2136_v8, %v2135_v21 }
 0x2ec   : > { %v2138_v17 = vrot.slane %v2137_v50, 1 }
 0x2ee   : > { %v2139_v20 = vadd.f32 %v2138_v17, %v2137_v50 }
 0x2f0   : > { %2239 = vpush %v2139_v20 }
 0x320   : > { %2147 = sbr.rel (%p2234_p6) target bundleno = 998 (0x3e6), region = 48 }
 0x321   : > { %s2240_s14 = spop %2239 }
 0x322   : > { %s2141_s15 = sadd.f32 %s2240_s14, %s2111_s13 }
 0x324   : > { %2143 = sst [smem:[#allocation2]] %s2141_s15 }
 0x325   : > { %2313 = vlog2.f32 %v3324_v15  ;;  %vm2150_vm15 = vcmask 3072   ;;  %s2161_s16 = sld [smem:[#allocation2]] }
 0x32b   : > { %v2314_v22 = vpop.eup %2313 }
 0x32c   : > { %v2149_v34 = vmul.f32 0.6931472, %v2314_v22 }
 0x32e   : > { %v2151_v13 = vsel %vm2150_vm15, %v2149_v34, 0.0 }
 0x32f   : > { %2152 = vadd.xlane.f32.xlu0 %v2151_v13 }
 0x3a2   : > { %v2153_v23 = vpop.xlane.xlu0 %2152 }
 0x3a3   : > { %v2154_v4 = vrot.slane %v2153_v23, 4 }
 0x3a5   : > { %v2155_v54 = vadd.f32 %v2154_v4, %v2153_v23 }
 0x3a7   : > { %v2156_v38 = vrot.slane %v2155_v54, 2 }
 0x3a9   : > { %v2157_v49 = vadd.f32 %v2156_v38, %v2155_v54 }
 0x3ab   : > { %v2158_v16 = vrot.slane %v2157_v49, 1 }
 0x3ad   : > { %v2159_v18 = vadd.f32 %v2158_v16, %v2157_v49 }
 0x3af   : > { %2241 = vpush %v2159_v18 }
 0x3e0   : > { %s2242_s17 = spop %2241 }
 0x3e1   : > { %s2162_s18 = smul.f32 0.1, %s2242_s17 }
 0x3e3   : > { %s2163_s19 = sadd.f32 %s2162_s18, %s2161_s16 }
 0x3e5   : > { %2165 = sst [smem:[#allocation4]] %s2163_s19 }
 0x3e6 PF: > { %p2250_p7 = scmp.eq.s32.totalorder %s2383_s21, 2  ;;  %s2172_s23 = sshll.u32 %s3646_s5, 4  ;;  %s2173_s23 = int_to_ptr.hbm [resolvable:$true] %s2172_s23 }
 0x3e7   : > { %s2343_s24 = smov [#allocation4]  }
 0x3e8   : > { %2246 = dma.smem_to_hbm (%p2250_p7), %s2343_s24, 16, %s2173_s23, [#allocation5]  }
 0x3e9   : > { %2334 = dma.done.wait (%p2250_p7), [#allocation5], 16  }
 0x3ea   : > { %2336 = vsyncadd (%p2250_p7), [#allocation5], 4294967280 }
 0x3eb   : > { %2181 = sfence }
 0x3ec PF: > { %s18_s20 = sadd.s32 1, %s2339_s20  }
 0x3ed   : > { %p15_p8 = scmp.ge.s32.totalorder %s18_s20, 5  }
 0x3ef   :  { %17 = sbr.rel (!%p15_p8) target bundleno = 4 (0x4), region = 83 }
 0x3f4   :  { %2187 = vsyncpa [#allocation5], 1 }
 0x3f5   :  { %2189 = vsyncpa [#allocation5 + $0x1], 1 }

</bundles_post_ra>
